<compile_context>
chip_gen: v5e
topology: v5e:2x2
jax: 0.10.0
libtpu: 0.0.40
codegen_flags: <defaults>
</compile_context>

<pallas_src>
import functools

import jax
import jax.numpy as jnp
from jax import lax
from jax.experimental import pallas as pl
from jax.experimental.pallas import tpu as pltpu

TEMPERATURE = 0.07
BASE_TEMPERATURE = 0.07


def _supcon_kernel(anchor_f_ref, anchor_l_ref, contrast_ft_ref, all_l_ref,
                   loss_ref, m_ref, neg_ref, cnt_ref, psum_ref,
                   *, inv_temp, scale, n_valid, nk, use_bf16_exp):
    """Per-anchor SupCon loss for one tile of anchor rows, chunked over contrast.

    anchor_f_ref:    (TM, D)   anchor feature tile (f32 or bf16)
    anchor_l_ref:    (TM, 1)   int32 anchor labels
    contrast_ft_ref: (D,  NC)  pre-transposed contrast features (resident, 1-buffered)
    all_l_ref:       (1,  NC)  int32 labels, lane-dense (resident, 1-buffered)
    loss_ref:        (TM, 1)   f32 per-anchor loss (output)
    m/neg/cnt/psum:  (TM, 1)   f32 VMEM scratch accumulators
    """
    tm = anchor_f_ref.shape[0]
    n_cols = contrast_ft_ref.shape[1]
    n_chunks = n_cols // nk

    # Fold 1/temperature into the small (TM, D) anchor tile (cheaper than
    # scaling every (TM, NK) similarity chunk); keep the MXU input dtype.
    a = anchor_f_ref[...]
    a = (a.astype(jnp.float32) * inv_temp).astype(a.dtype)
    al = anchor_l_ref[...]                                   # (TM, 1) int32

    def _exp(x):
        # Optional bf16 exp (v6e/v7x EUP has a bf16 path); logits <= 0 so it is
        # well-conditioned.  Reductions and the log stay f32 either way.
        if use_bf16_exp:
            return jnp.exp(x.astype(jnp.bfloat16)).astype(jnp.float32)
        return jnp.exp(x)

    def load_chunk(c):
        off = pl.multiple_of(c * nk, nk)
        f = contrast_ft_ref[:, pl.ds(off, nk)]               # (D, NK)
        lbl = all_l_ref[:, pl.ds(off, nk)]                   # (1, NK)
        adc = jnp.dot(a, f, preferred_element_type=jnp.float32)   # (TM, NK) f32
        # Padded-column mask from a (1, NK) iota; broadcasting does the rest.
        col = off + lax.broadcasted_iota(jnp.int32, (1, nk), 1)
        valid = col < n_valid                                # (1, NK) bool
        pos = jnp.logical_and(al == lbl, valid)              # (TM, NK) bool
        adc = jnp.where(valid, adc, -1e30)                   # never the row max
        return adc, pos

    m_ref[...] = jnp.full((tm, 1), -1e30, jnp.float32)
    neg_ref[...] = jnp.zeros((tm, 1), jnp.float32)
    cnt_ref[...] = jnp.zeros((tm, 1), jnp.float32)
    psum_ref[...] = jnp.zeros((tm, 1), jnp.float32)

    # ---- Pass 1: running row max, rescaled negative exp-sum, positive count.
    @pl.loop(0, n_chunks)
    def _(c):
        adc, pos = load_chunk(c)
        m_old = m_ref[...]
        m_new = jnp.maximum(m_old, jnp.max(adc, axis=1, keepdims=True))
        e = _exp(adc - m_new)                                 # (TM, NK)
        neg_ref[...] = (neg_ref[...] * jnp.exp(m_old - m_new)
                        + jnp.sum(jnp.where(pos, 0.0, e), axis=1, keepdims=True))
        cnt_ref[...] = cnt_ref[...] + jnp.sum(pos.astype(jnp.float32),
                                              axis=1, keepdims=True)
        m_ref[...] = m_new

    m = m_ref[...]                                            # final row max
    neg = neg_ref[...]                                        # final negative exp-sum

    # ---- Pass 2: sum of log-probs over positive columns using final stats.
    @pl.loop(0, n_chunks)
    def _(c):
        adc, pos = load_chunk(c)
        logits = adc - m
        log_prob = logits - jnp.log(_exp(logits) + neg)       # (TM, NK)
        psum_ref[...] = psum_ref[...] + jnp.sum(jnp.where(pos, log_prob, 0.0),
                                                axis=1, keepdims=True)

    # pos_cnt >= 1 for every real row (self-contrast diagonal); the max() only
    # protects padded anchor rows, which are sliced off in the wrapper.
    mean_log_prob_pos = psum_ref[...] / jnp.maximum(cnt_ref[...], 1.0)
    loss_ref[...] = (-scale) * mean_log_prob_pos


def supcon_loss(feats, labels, feats_weights=None,
                temperature=TEMPERATURE, base_temperature=BASE_TEMPERATURE,
                tile_m=128, chunk_n=1024, use_bf16_matmul=True,
                use_bf16_exp=False, vmem_limit_bytes=None):
    """JAX/Pallas equivalent of SupConLoss.forward (pixelwise weighted variant)."""
    n, d = feats.shape

    # --- row (anchor) tiling: multiples of 16 (safe for bf16 sublane packing),
    #     shrink the tile so small N still gives >= 2 row tiles (v7x megacore).
    unit = 16
    tile_m = max(unit, (int(tile_m) // unit) * unit)
    if n > unit:
        tile_m = min(tile_m, ((n + 1) // 2 + unit - 1) // unit * unit)
    tile_m = min(tile_m, ((n + unit - 1) // unit) * unit)
    n_rows = ((n + tile_m - 1) // tile_m) * tile_m

    # --- column (contrast) chunking: multiples of 128 lanes.
    n_lane = ((n + 127) // 128) * 128
    chunk_n = max(128, (int(chunk_n) // 128) * 128)
    chunk_n = min(chunk_n, n_lane)
    n_cols = ((n + chunk_n - 1) // chunk_n) * chunk_n

    mm_dtype = jnp.bfloat16 if use_bf16_matmul else feats.dtype
    feats_mm = feats.astype(mm_dtype)
    labels_i = labels.reshape(-1).astype(jnp.int32)

    anchor_f = jnp.pad(feats_mm, ((0, n_rows - n), (0, 0)))             # (NR, D)
    contrast_ft = jnp.pad(feats_mm.T, ((0, 0), (0, n_cols - n)))        # (D, NC)
    anchor_l = jnp.pad(labels_i, (0, n_rows - n),
                       constant_values=-1).reshape(n_rows, 1)           # (NR, 1)
    all_l = jnp.pad(labels_i, (0, n_cols - n),
                    constant_values=-1).reshape(1, n_cols)              # (1, NC)

    kernel = functools.partial(
        _supcon_kernel,
        inv_temp=1.0 / float(temperature),
        scale=float(temperature) / float(base_temperature),
        n_valid=n, nk=chunk_n, use_bf16_exp=use_bf16_exp)

    itemsize = jnp.dtype(mm_dtype).itemsize
    if vmem_limit_bytes is None:
        # Size the scoped VMEM limit from the real working set (+ headroom)
        # instead of requesting v7x's entire 64 MiB physical VMEM.
        resident_bytes = d * n_cols * itemsize + 32 * n_cols            # contrast^T + label row
        tile_bytes = 2 * (tile_m * max(d, 128) * itemsize + 2 * tile_m * 128 * 4)
        work_bytes = 8 * tile_m * chunk_n * 4                           # live (TM, NK) f32 temps
        vmem_limit_bytes = max(24 * 1024 * 1024,
                               resident_bytes + tile_bytes + work_bytes + 4 * 1024 * 1024)

    cost = pl.CostEstimate(
        flops=2 * 2 * n_rows * n_cols * d,               # two chunked matmul passes
        transcendentals=3 * n_rows * n_cols,             # exp (pass 1) + exp + log (pass 2)
        bytes_accessed=(n_rows + n_cols) * d * itemsize + (n_rows + n_cols + n_rows) * 4)

    per_row = pl.pallas_call(
        kernel,
        out_shape=jax.ShapeDtypeStruct((n_rows, 1), jnp.float32),
        grid_spec=pltpu.PrefetchScalarGridSpec(
            num_scalar_prefetch=0,
            grid=(n_rows // tile_m,),
            in_specs=[
                pl.BlockSpec((tile_m, d), lambda i: (i, 0)),     # anchor feat tile
                pl.BlockSpec((tile_m, 1), lambda i: (i, 0)),     # anchor label tile
                # Resident blocks never change -> single-buffer them.
                pl.BlockSpec((d, n_cols), lambda i: (0, 0),
                             pipeline_mode=pl.Buffered(1)),       # contrast^T
                pl.BlockSpec((1, n_cols), lambda i: (0, 0),
                             pipeline_mode=pl.Buffered(1)),       # labels row
            ],
            out_specs=pl.BlockSpec((tile_m, 1), lambda i: (i, 0)),
            scratch_shapes=[pltpu.VMEM((tile_m, 1), jnp.float32)] * 4,   # m, neg, cnt, psum
        ),
        compiler_params=pltpu.CompilerParams(
            dimension_semantics=("parallel",),
            vmem_limit_bytes=int(vmem_limit_bytes)),
        cost_estimate=cost,
    )(anchor_f, anchor_l, contrast_ft, all_l)

    loss_rows = per_row[:n, 0]                            # drop padded rows

    if feats_weights is not None:
        w = feats_weights.reshape(-1).astype(jnp.float32)
        return jnp.sum(loss_rows * (w / jnp.sum(w)))
    return jnp.mean(loss_rows)


def _supcon_loss_ref(feats, labels, feats_weights=None,
                     temperature=TEMPERATURE, base_temperature=BASE_TEMPERATURE):
    """Pure-JAX reference mirroring the PyTorch forward, for verification."""
    labels2d = labels.reshape(-1, 1)
    mask = (labels2d == labels2d.T).astype(jnp.float32)
    adc = jnp.matmul(feats, feats.T) / temperature
    logits_max = jnp.max(adc, axis=1, keepdims=True)
    logits = adc - logits_max
    neg_mask = 1.0 - mask
    neg_logits = jnp.sum(jnp.exp(logits) * neg_mask, axis=1, keepdims=True)
    exp_logits = jnp.exp(logits)
    log_prob = logits - jnp.log(exp_logits + neg_logits)
    mean_log_prob_pos = jnp.sum(mask * log_prob, axis=1) / jnp.sum(mask, axis=1)
    loss = -(temperature / base_temperature) * mean_log_prob_pos
    if feats_weights is not None:
        w_norm = feats_weights / jnp.sum(feats_weights, axis=0)
        return jnp.sum(loss * w_norm)
    return jnp.mean(loss)


if __name__ == "__main__":
    key = jax.random.PRNGKey(0)
    k_f, k_l, k_w = jax.random.split(key, 3)

    N, D = 200, 32                     # deliberately NOT a multiple of the row tile / lane width
    feats = jax.random.normal(k_f, (N, D), dtype=jnp.float32)
    feats = feats / jnp.linalg.norm(feats, axis=1, keepdims=True)
    labels = jax.random.randint(k_l, (N,), 0, 4, dtype=jnp.int32)
    weights = jax.random.uniform(k_w, (N,), dtype=jnp.float32) + 0.1

    ref_mean = _supcon_loss_ref(feats, labels)
    ref_w = _supcon_loss_ref(feats, labels, feats_weights=weights)

    # f32 MXU path, single contrast chunk, 2 row tiles (exercises row/col padding)
    loss_f32 = supcon_loss(feats, labels, use_bf16_matmul=False)
    jax.block_until_ready(loss_f32)
    assert jnp.allclose(loss_f32, ref_mean, rtol=1e-4, atol=1e-4), (loss_f32, ref_mean)

    # weighted path, forced multi-chunk contrast loop + multi-tile grid
    loss_w = supcon_loss(feats, labels, feats_weights=weights,
                         use_bf16_matmul=False, chunk_n=128, tile_m=64)
    jax.block_until_ready(loss_w)
    assert jnp.allclose(loss_w, ref_w, rtol=1e-4, atol=1e-4), (loss_w, ref_w)

    # default path: bf16 MXU inputs (f32 accumulation + f32 elementwise math)
    loss_bf16 = supcon_loss(feats, labels)
    jax.block_until_ready(loss_bf16)
    assert jnp.allclose(loss_bf16, ref_mean, rtol=5e-2, atol=5e-2), (loss_bf16, ref_mean)

    print("KERNEL_OK")
</pallas_src>

<mosaic_0001>
module attributes {stable_mosaic.version = 11 : i64} {
  func.func @_supcon_kernel(%arg0: i32, %arg1: memref<112x32xf32, #tpu.memory_space<vmem>>, %arg2: memref<112x1xi32, #tpu.memory_space<vmem>>, %arg3: memref<32x256xf32, #tpu.memory_space<vmem>>, %arg4: memref<1x256xi32, #tpu.memory_space<vmem>>, %arg5: memref<112x1xf32, #tpu.memory_space<vmem>>, %arg6: memref<112x1xf32, #tpu.memory_space<vmem>>, %arg7: memref<112x1xf32, #tpu.memory_space<vmem>>, %arg8: memref<112x1xf32, #tpu.memory_space<vmem>>, %arg9: memref<112x1xf32, #tpu.memory_space<vmem>>) attributes {dimension_semantics = [#tpu.dimension_semantics<parallel>], iteration_bounds = array<i64: 2>, scalar_prefetch = 0 : i64, scratch_operands = 4 : i64, tpu.core_type = #tpu.core_type<tc>, window_params = [{transform_indices = @transform_0, window_bounds = array<i64: 112, 32>}, {transform_indices = @transform_1, window_bounds = array<i64: 112, 1>}, {pipeline_mode = #tpu.pipeline_mode<synchronous>, transform_indices = @transform_2, window_bounds = array<i64: 32, 256>}, {pipeline_mode = #tpu.pipeline_mode<synchronous>, transform_indices = @transform_3, window_bounds = array<i64: 1, 256>}, {transform_indices = @transform_4, window_bounds = array<i64: 112, 1>}]} {
    %c0 = arith.constant 0 : index
    %c0_0 = arith.constant 0 : index
    %0 = vector.load %arg1[%c0, %c0_0] : memref<112x32xf32, #tpu.memory_space<vmem>>, vector<112x32xf32>
    %cst = arith.constant 14.2857141 : f32
    %1 = vector.broadcast %cst : f32 to vector<112x32xf32>
    %2 = arith.mulf %0, %1 : vector<112x32xf32>
    %c0_1 = arith.constant 0 : index
    %c0_2 = arith.constant 0 : index
    %3 = vector.load %arg2[%c0_1, %c0_2] : memref<112x1xi32, #tpu.memory_space<vmem>>, vector<112x1xi32>
    %cst_3 = arith.constant -1.000000e+30 : f32
    %4 = vector.broadcast %cst_3 : f32 to vector<112x1xf32>
    %c0_4 = arith.constant 0 : index
    %c0_5 = arith.constant 0 : index
    %5 = vector.load %arg6[%c0_4, %c0_5] : memref<112x1xf32, #tpu.memory_space<vmem>>, vector<112x1xf32>
    tpu.vector_store %arg6[%c0_4, %c0_5], %4 {strides = array<i32>} : memref<112x1xf32, #tpu.memory_space<vmem>>, vector<112x1xf32>,
    %cst_6 = arith.constant 0.000000e+00 : f32
    %6 = vector.broadcast %cst_6 : f32 to vector<112x1xf32>
    %c0_7 = arith.constant 0 : index
    %c0_8 = arith.constant 0 : index
    %7 = vector.load %arg7[%c0_7, %c0_8] : memref<112x1xf32, #tpu.memory_space<vmem>>, vector<112x1xf32>
    tpu.vector_store %arg7[%c0_7, %c0_8], %6 {strides = array<i32>} : memref<112x1xf32, #tpu.memory_space<vmem>>, vector<112x1xf32>,
    %cst_9 = arith.constant 0.000000e+00 : f32
    %8 = vector.broadcast %cst_9 : f32 to vector<112x1xf32>
    %c0_10 = arith.constant 0 : index
    %c0_11 = arith.constant 0 : index
    %9 = vector.load %arg8[%c0_10, %c0_11] : memref<112x1xf32, #tpu.memory_space<vmem>>, vector<112x1xf32>
    tpu.vector_store %arg8[%c0_10, %c0_11], %8 {strides = array<i32>} : memref<112x1xf32, #tpu.memory_space<vmem>>, vector<112x1xf32>,
    %cst_12 = arith.constant 0.000000e+00 : f32
    %10 = vector.broadcast %cst_12 : f32 to vector<112x1xf32>
    %c0_13 = arith.constant 0 : index
    %c0_14 = arith.constant 0 : index
    %11 = vector.load %arg9[%c0_13, %c0_14] : memref<112x1xf32, #tpu.memory_space<vmem>>, vector<112x1xf32>
    tpu.vector_store %arg9[%c0_13, %c0_14], %10 {strides = array<i32>} : memref<112x1xf32, #tpu.memory_space<vmem>>, vector<112x1xf32>,
    %c0_i32 = arith.constant 0 : i32
    %c1_i32 = arith.constant 1 : i32
    %12 = arith.muli %c0_i32, %c1_i32 : i32
    %c0_i32_15 = arith.constant 0 : i32
    %13 = arith.addi %c0_i32_15, %12 : i32
    %c256_i32 = arith.constant 256 : i32
    %14 = arith.muli %13, %c256_i32 : i32
    %15 = tpu.assume_multiple %14, 256 : i32
    %c0_16 = arith.constant 0 : index
    %16 = arith.index_cast %15 : i32 to index
    %17 = vector.load %arg3[%c0_16, %16] : memref<32x256xf32, #tpu.memory_space<vmem>>, vector<32x256xf32>
    %c0_17 = arith.constant 0 : index
    %18 = arith.index_cast %15 : i32 to index
    %19 = vector.load %arg4[%c0_17, %18] : memref<1x256xi32, #tpu.memory_space<vmem>>, vector<1x256xi32>
    %cst_18 = arith.constant dense<0.000000e+00> : vector<112x256xf32>
    %20 = tpu.matmul %2, %17, %cst_18 {dimension_numbers = #tpu.dot_dimension_numbers<[1], [0], [0], [1], [0, 0, 1, 1], [], []>} : vector<112x32xf32>, vector<32x256xf32>, vector<112x256xf32> -> vector<112x256xf32>
    %21 = tpu.iota {dimensions = array<i32: 1>} : vector<1x256xi32>
    %22 = vector.broadcast %15 : i32 to vector<1x256xi32>
    %23 = arith.addi %22, %21 : vector<1x256xi32>
    %c200_i32 = arith.constant 200 : i32
    %24 = vector.broadcast %c200_i32 : i32 to vector<1x256xi32>
    %25 = arith.cmpi slt, %23, %24 : vector<1x256xi32>
    %26 = vector.broadcast %3 : vector<112x1xi32> to vector<112x256xi32>
    %27 = vector.broadcast %19 : vector<1x256xi32> to vector<112x256xi32>
    %28 = arith.cmpi eq, %26, %27 : vector<112x256xi32>
    %29 = vector.broadcast %25 : vector<1x256xi1> to vector<112x256xi1>
    %30 = arith.andi %28, %29 : vector<112x256xi1>
    %cst_19 = arith.constant -1.000000e+30 : f32
    %31 = vector.shape_cast %25 : vector<1x256xi1> to vector<1x256xi1>
    %32 = vector.broadcast %31 : vector<1x256xi1> to vector<112x256xi1>
    %33 = vector.broadcast %cst_19 : f32 to vector<112x256xf32>
    %34 = arith.select %32, %20, %33 : vector<112x256xi1>, vector<112x256xf32>
    %c0_20 = arith.constant 0 : index
    %c0_21 = arith.constant 0 : index
    %35 = vector.load %arg6[%c0_20, %c0_21] : memref<112x1xf32, #tpu.memory_space<vmem>>, vector<112x1xf32>
    %cst_22 = arith.constant dense<0xFF800000> : vector<112xf32>
    %36 = vector.multi_reduction <maximumf>, %34, %cst_22 [1] : vector<112x256xf32> to vector<112xf32>
    %37 = vector.shape_cast %36 : vector<112xf32> to vector<112x1xf32>
    %38 = arith.maximumf %35, %37 : vector<112x1xf32>
    %39 = vector.broadcast %38 : vector<112x1xf32> to vector<112x256xf32>
    %40 = arith.subf %34, %39 : vector<112x256xf32>
    %41 = math.exp %40 : vector<112x256xf32>
    %c0_23 = arith.constant 0 : index
    %c0_24 = arith.constant 0 : index
    %42 = vector.load %arg7[%c0_23, %c0_24] : memref<112x1xf32, #tpu.memory_space<vmem>>, vector<112x1xf32>
    %43 = arith.subf %35, %38 : vector<112x1xf32>
    %44 = math.exp %43 : vector<112x1xf32>
    %45 = arith.mulf %42, %44 : vector<112x1xf32>
    %cst_25 = arith.constant 0.000000e+00 : f32
    %46 = vector.broadcast %cst_25 : f32 to vector<112x256xf32>
    %47 = arith.select %30, %46, %41 : vector<112x256xi1>, vector<112x256xf32>
    %cst_26 = arith.constant dense<0.000000e+00> : vector<112xf32>
    %48 = vector.multi_reduction <add>, %47, %cst_26 [1] : vector<112x256xf32> to vector<112xf32>
    %49 = vector.shape_cast %48 : vector<112xf32> to vector<112x1xf32>
    %50 = arith.addf %45, %49 : vector<112x1xf32>
    %c0_27 = arith.constant 0 : index
    %c0_28 = arith.constant 0 : index
    %51 = vector.load %arg7[%c0_27, %c0_28] : memref<112x1xf32, #tpu.memory_space<vmem>>, vector<112x1xf32>
    tpu.vector_store %arg7[%c0_27, %c0_28], %50 {strides = array<i32>} : memref<112x1xf32, #tpu.memory_space<vmem>>, vector<112x1xf32>,
    %c0_29 = arith.constant 0 : index
    %c0_30 = arith.constant 0 : index
    %52 = vector.load %arg8[%c0_29, %c0_30] : memref<112x1xf32, #tpu.memory_space<vmem>>, vector<112x1xf32>
    %53 = arith.extui %30 : vector<112x256xi1> to vector<112x256xi32>
    %54 = arith.sitofp %53 : vector<112x256xi32> to vector<112x256xf32>
    %cst_31 = arith.constant dense<0.000000e+00> : vector<112xf32>
    %55 = vector.multi_reduction <add>, %54, %cst_31 [1] : vector<112x256xf32> to vector<112xf32>
    %56 = vector.shape_cast %55 : vector<112xf32> to vector<112x1xf32>
    %57 = arith.addf %52, %56 : vector<112x1xf32>
    %c0_32 = arith.constant 0 : index
    %c0_33 = arith.constant 0 : index
    %58 = vector.load %arg8[%c0_32, %c0_33] : memref<112x1xf32, #tpu.memory_space<vmem>>, vector<112x1xf32>
    tpu.vector_store %arg8[%c0_32, %c0_33], %57 {strides = array<i32>} : memref<112x1xf32, #tpu.memory_space<vmem>>, vector<112x1xf32>,
    %c0_34 = arith.constant 0 : index
    %c0_35 = arith.constant 0 : index
    %59 = vector.load %arg6[%c0_34, %c0_35] : memref<112x1xf32, #tpu.memory_space<vmem>>, vector<112x1xf32>
    tpu.vector_store %arg6[%c0_34, %c0_35], %38 {strides = array<i32>} : memref<112x1xf32, #tpu.memory_space<vmem>>, vector<112x1xf32>,
    %c1_i32_36 = arith.constant 1 : i32
    %c0_37 = arith.constant 0 : index
    %c0_38 = arith.constant 0 : index
    %60 = vector.load %arg6[%c0_37, %c0_38] : memref<112x1xf32, #tpu.memory_space<vmem>>, vector<112x1xf32>
    %c0_39 = arith.constant 0 : index
    %c0_40 = arith.constant 0 : index
    %61 = vector.load %arg7[%c0_39, %c0_40] : memref<112x1xf32, #tpu.memory_space<vmem>>, vector<112x1xf32>
    %c0_i32_41 = arith.constant 0 : i32
    %c1_i32_42 = arith.constant 1 : i32
    %62 = arith.muli %c0_i32_41, %c1_i32_42 : i32
    %c0_i32_43 = arith.constant 0 : i32
    %63 = arith.addi %c0_i32_43, %62 : i32
    %c256_i32_44 = arith.constant 256 : i32
    %64 = arith.muli %63, %c256_i32_44 : i32
    %65 = tpu.assume_multiple %64, 256 : i32
    %c0_45 = arith.constant 0 : index
    %66 = arith.index_cast %65 : i32 to index
    %67 = vector.load %arg3[%c0_45, %66] : memref<32x256xf32, #tpu.memory_space<vmem>>, vector<32x256xf32>
    %c0_46 = arith.constant 0 : index
    %68 = arith.index_cast %65 : i32 to index
    %69 = vector.load %arg4[%c0_46, %68] : memref<1x256xi32, #tpu.memory_space<vmem>>, vector<1x256xi32>
    %cst_47 = arith.constant dense<0.000000e+00> : vector<112x256xf32>
    %70 = tpu.matmul %2, %67, %cst_47 {dimension_numbers = #tpu.dot_dimension_numbers<[1], [0], [0], [1], [0, 0, 1, 1], [], []>} : vector<112x32xf32>, vector<32x256xf32>, vector<112x256xf32> -> vector<112x256xf32>
    %71 = tpu.iota {dimensions = array<i32: 1>} : vector<1x256xi32>
    %72 = vector.broadcast %65 : i32 to vector<1x256xi32>
    %73 = arith.addi %72, %71 : vector<1x256xi32>
    %c200_i32_48 = arith.constant 200 : i32
    %74 = vector.broadcast %c200_i32_48 : i32 to vector<1x256xi32>
    %75 = arith.cmpi slt, %73, %74 : vector<1x256xi32>
    %76 = vector.broadcast %3 : vector<112x1xi32> to vector<112x256xi32>
    %77 = vector.broadcast %69 : vector<1x256xi32> to vector<112x256xi32>
    %78 = arith.cmpi eq, %76, %77 : vector<112x256xi32>
    %79 = vector.broadcast %75 : vector<1x256xi1> to vector<112x256xi1>
    %80 = arith.andi %78, %79 : vector<112x256xi1>
    %cst_49 = arith.constant -1.000000e+30 : f32
    %81 = vector.shape_cast %75 : vector<1x256xi1> to vector<1x256xi1>
    %82 = vector.broadcast %81 : vector<1x256xi1> to vector<112x256xi1>
    %83 = vector.broadcast %cst_49 : f32 to vector<112x256xf32>
    %84 = arith.select %82, %70, %83 : vector<112x256xi1>, vector<112x256xf32>
    %85 = vector.broadcast %60 : vector<112x1xf32> to vector<112x256xf32>
    %86 = arith.subf %84, %85 : vector<112x256xf32>
    %87 = math.exp %86 : vector<112x256xf32>
    %88 = vector.broadcast %61 : vector<112x1xf32> to vector<112x256xf32>
    %89 = arith.addf %87, %88 : vector<112x256xf32>
    %90 = math.log %89 : vector<112x256xf32>
    %91 = arith.subf %86, %90 : vector<112x256xf32>
    %c0_50 = arith.constant 0 : index
    %c0_51 = arith.constant 0 : index
    %92 = vector.load %arg9[%c0_50, %c0_51] : memref<112x1xf32, #tpu.memory_space<vmem>>, vector<112x1xf32>
    %cst_52 = arith.constant 0.000000e+00 : f32
    %93 = vector.broadcast %cst_52 : f32 to vector<112x256xf32>
    %94 = arith.select %80, %91, %93 : vector<112x256xi1>, vector<112x256xf32>
    %cst_53 = arith.constant dense<0.000000e+00> : vector<112xf32>
    %95 = vector.multi_reduction <add>, %94, %cst_53 [1] : vector<112x256xf32> to vector<112xf32>
    %96 = vector.shape_cast %95 : vector<112xf32> to vector<112x1xf32>
    %97 = arith.addf %92, %96 : vector<112x1xf32>
    %c0_54 = arith.constant 0 : index
    %c0_55 = arith.constant 0 : index
    %98 = vector.load %arg9[%c0_54, %c0_55] : memref<112x1xf32, #tpu.memory_space<vmem>>, vector<112x1xf32>
    tpu.vector_store %arg9[%c0_54, %c0_55], %97 {strides = array<i32>} : memref<112x1xf32, #tpu.memory_space<vmem>>, vector<112x1xf32>,
    %c1_i32_56 = arith.constant 1 : i32
    %c0_57 = arith.constant 0 : index
    %c0_58 = arith.constant 0 : index
    %99 = vector.load %arg9[%c0_57, %c0_58] : memref<112x1xf32, #tpu.memory_space<vmem>>, vector<112x1xf32>
    %c0_59 = arith.constant 0 : index
    %c0_60 = arith.constant 0 : index
    %100 = vector.load %arg8[%c0_59, %c0_60] : memref<112x1xf32, #tpu.memory_space<vmem>>, vector<112x1xf32>
    %cst_61 = arith.constant 1.000000e+00 : f32
    %101 = vector.broadcast %cst_61 : f32 to vector<112x1xf32>
    %102 = arith.maximumf %100, %101 : vector<112x1xf32>
    %103 = arith.divf %99, %102 : vector<112x1xf32>
    %cst_62 = arith.constant -1.000000e+00 : f32
    %104 = vector.broadcast %cst_62 : f32 to vector<112x1xf32>
    %105 = arith.mulf %104, %103 : vector<112x1xf32>
    %c0_63 = arith.constant 0 : index
    %c0_64 = arith.constant 0 : index
    %106 = vector.load %arg5[%c0_63, %c0_64] : memref<112x1xf32, #tpu.memory_space<vmem>>, vector<112x1xf32>
    tpu.vector_store %arg5[%c0_63, %c0_64], %105 {strides = array<i32>} : memref<112x1xf32, #tpu.memory_space<vmem>>, vector<112x1xf32>,
    return
  }
  func.func @transform_0(%arg0: i32) -> (i32, i32) {
    %c0_i32 = arith.constant 0 : i32
    %c0_i32_0 = arith.constant 0 : i32
    return %arg0, %c0_i32 : i32, i32
  }
  func.func @transform_1(%arg0: i32) -> (i32, i32) {
    %c0_i32 = arith.constant 0 : i32
    %c0_i32_0 = arith.constant 0 : i32
    return %arg0, %c0_i32 : i32, i32
  }
  func.func @transform_2(%arg0: i32) -> (i32, i32) {
    %c0_i32 = arith.constant 0 : i32
    %c0_i32_0 = arith.constant 0 : i32
    %c0_i32_1 = arith.constant 0 : i32
    return %c0_i32, %c0_i32_0 : i32, i32
  }
  func.func @transform_3(%arg0: i32) -> (i32, i32) {
    %c0_i32 = arith.constant 0 : i32
    %c0_i32_0 = arith.constant 0 : i32
    %c0_i32_1 = arith.constant 0 : i32
    return %c0_i32, %c0_i32_0 : i32, i32
  }
  func.func @transform_4(%arg0: i32) -> (i32, i32) {
    %c0_i32 = arith.constant 0 : i32
    %c0_i32_0 = arith.constant 0 : i32
    return %arg0, %c0_i32 : i32, i32
  }
}

</mosaic_0001>

<bundles_post_ra>
// kernel: tpu_custom_call.1
= control target key start
LH: loop header
LB: loop body
LE: loop exit
PB: predicated region body
PF: predicated region fallthrough
CT: control target
= control target key end

     0   :  { %s2583_s15 = smov 0   ;;  %s4175_s0 = inlined_call_operand.vmem [shape: f32[224,32], index: 0, kind: input, shape index: {}]   ;;  %s4176_s1 = inlined_call_operand.vmem [shape: s32[224,1], index: 1, kind: input, shape index: {}]   ;;  %s4177_s2 = inlined_call_operand.vmem [shape: f32[32,256], index: 2, kind: input, shape index: {}]   ;;  %s4178_s3 = inlined_call_operand.vmem [shape: s32[1,256], index: 3, kind: input, shape index: {}]   ;;  %s4179_s4 = inlined_call_operand.vmem [shape: f32[224,1], index: 4, kind: output, shape index: {}]  }
   0x1 LB: > { %s2215_s16 = sadd.s32 4294967295, %s2553_s15   ;;  %p2219_p0 = scmp.ge.s32.totalorder %s2553_s15, 1  ;;  %s2553_s15 = sphi %s2583_s15, %s14_s15  }
   0x2   : > { %p174_p1 = scmp.lt.s32.totalorder %s2553_s15, 3 }
   0x4   : > { %p175_p2 = pnand %p2219_p0, %p174_p1 }
   0x6   : > { %178 = sbr.rel (%p175_p2) target bundleno = 878 (0x36e), region = 36 }
   0xb   : > { %v329_v0 = vld [vmem:[%s4177_s2 + $0x38] sm:$0xff]  ;;  %v328_v1 = vld [vmem:[%s4177_s2 + $0x30] sm:$0xff]  ;;  %v327_v2 = vld [vmem:[%s4177_s2 + $0x28] sm:$0xff]  ;;  %s205_s23 = smul.u32 14, %s2215_s16  ;;  %v2555_v4 = vmov 0   ;;  %vm331_vm0 = vcmask 261120   ;;  %v492_v51 = vlaneseq }
   0xc   : > { %445 = vmatpush.msra.mxu1 %v329_v0  ;;  %386 = vmatpush.msra.mxu0 %v328_v1  ;;  %v326_v3 = vld [vmem:[%s4177_s2 + $0x20] sm:$0xff]  ;;  %v325_v5 = vld [vmem:[%s4177_s2 + $0x18] sm:$0xff]  ;;  %v324_v6 = vld [vmem:[%s4177_s2 + $0x10] sm:$0xff]  ;;  %v2556_v62 = vmov 0.0  }
   0xd   : > { %2321 = vset.pattern.permute.xlu1 %v2555_v4  ;;  %2320 = vset.pattern.permute.xlu0 %v2555_v4  ;;  %p206_p3 = scmp.lt.s32.totalorder %s205_s23, 27  ;;  %v323_v7 = vld [vmem:[%s4177_s2 + $0x8] sm:$0xff]  ;;  %v322_v8 = vld [vmem:[%s4177_s2] sm:$0xff]  ;;  %v493_v53 = vand.u32 127, %v492_v51 }
   0xe   : > { %446 = vmatpush.msra.mxu1 %v327_v2  ;;  %387 = vmatpush.msra.mxu0 %v326_v3  ;;  %v330_v54 = vld [vmem:[%s4178_s3] sm:$0x3] }
   0xf   : > { %s4407_s23 = smov (!%p206_p3, %s205_s23), 27  ;;  %2322 = vset.pattern.permute.xlu2 %v2555_v4  ;;  %1286 = vmatpush.msra.mxu3 %v329_v0  ;;  %v2719_v56 = vadd.s32 128, %v493_v53  ;;  %v2722_v57 = vperm.slane %v330_v54, 0  ;;  %v2724_v58 = vperm.slane %v330_v54, 1 }
  0x10   : > { %447 = vmatpush.msra.mxu1 %v325_v5  ;;  %388 = vmatpush.msra.mxu0 %v324_v6  ;;  %s2615_s8 = sshll.u32 %s4407_s23, 3 }
  0x11   : > { %1227 = vmatpush.msra.mxu2 %v328_v1  ;;  %1287 = vmatpush.msra.mxu3 %v327_v2  ;;  %s2621_s11 = scalar_lea.vmem %s4176_s1, %s2615_s8  ;;  %s2628_s14 = scalar_lea.vmem %s4175_s0, %s2615_s8  ;;  %4234 = vst [vmem:[#allocation6_spill] sm:$0xff] %v2719_v56  ;;  %vm4233_vm1 = vcmp.lt.s32.totalorder %v2719_v56, 200 }
  0x12   : > { %448 = vmatpush.msra.mxu1 %v323_v7  ;;  %389 = vmatpush.msra.mxu0 %v322_v8  ;;  %v253_v9 = vld [vmem:[%s2621_s11 + $0x10] sm:$0xff]  ;;  %v251_v10 = vld [vmem:[%s2621_s11] sm:$0xff]  ;;  %v224_v14 = vld [vmem:[%s2628_s14 + $0x8] sm:$0xff]  ;;  %s3950_s22 = scalar_lea.vmem %s4179_s4, %s2615_s8 }
  0x13   : > { %1228 = vmatpush.msra.mxu2 %v326_v3  ;;  %1288 = vmatpush.msra.mxu3 %v325_v5  ;;  %v223_v11 = vld [vmem:[%s2628_s14] sm:$0xff]  ;;  %v254_v15 = vld [vmem:[%s2621_s11 + $0x18] sm:$0xff]  ;;  %v252_v16 = vld [vmem:[%s2621_s11 + $0x8] sm:$0xff]  ;;  %v238_v18 = vmul.f32 14.285714, %v224_v14 }
  0x14   : > { %507 = vperm.xlu1 %2321, %v253_v9   ;;  %501 = vperm.xlu0 %2320, %v251_v10   ;;  %v255_v12 = vld [vmem:[%s2621_s11 + $0x20] sm:$0xff]  ;;  %v237_v13 = vmul.f32 14.285714, %v223_v11  ;;  %v256_v17 = vld [vmem:[%s2621_s11 + $0x28] sm:$0xff]  ;;  %v225_v19 = vld [vmem:[%s2628_s14 + $0x10] sm:$0xff] }
  0x15   : > { %513 = vperm.xlu2 %2322, %v255_v12   ;;  %1229 = vmatpush.msra.mxu2 %v324_v6  ;;  %v258_v20 = vld [vmem:[%s2621_s11 + $0x38] sm:$0xff]  ;;  %v257_v21 = vld [vmem:[%s2621_s11 + $0x30] sm:$0xff]  ;;  %v259_v22 = vld [vmem:[%s2621_s11 + $0x40] sm:$0xff]  ;;  %v239_v23 = vmul.f32 14.285714, %v225_v19 }
  0x16   : > { %1289 = vmatpush.msra.mxu3 %v323_v7  ;;  %2237 = vmatmul.msk.f32.vlgmr.msra.gmra.mxu1 %vm331_vm0, %v237_v13  ;;  %v226_v24 = vld [vmem:[%s2628_s14 + $0x18] sm:$0xff]  ;;  %v261_v25 = vld [vmem:[%s2621_s11 + $0x50] sm:$0xff]  ;;  %v260_v26 = vld [vmem:[%s2621_s11 + $0x48] sm:$0xff] }
  0x17   : > { %2223 = vmatmul.msk.f32.vlgmr.msra.gmra.mxu0 %vm331_vm0, %v237_v13  ;;  %1230 = vmatpush.msra.mxu2 %v322_v8  ;;  %v262_v27 = vld [vmem:[%s2621_s11 + $0x58] sm:$0xff]  ;;  %v240_v28 = vmul.f32 14.285714, %v226_v24  ;;  %v227_v29 = vld [vmem:[%s2628_s14 + $0x20] sm:$0xff]  ;;  %v264_v30 = vld [vmem:[%s2621_s11 + $0x68] sm:$0xff] }
  0x18   : > { %2293 = vmatmul.msk.f32.vlgmr.msra.gmra.mxu3 %vm331_vm0, %v237_v13  ;;  %2279 = vmatmul.msk.f32.vlgmr.msra.gmra.mxu2 %vm331_vm0, %v237_v13  ;;  %v263_v31 = vld [vmem:[%s2621_s11 + $0x60] sm:$0xff]  ;;  %v241_v32 = vmul.f32 14.285714, %v227_v29  ;;  %v228_v33 = vld [vmem:[%s2628_s14 + $0x28] sm:$0xff]  ;;  %v229_v35 = vld [vmem:[%s2628_s14 + $0x30] sm:$0xff] }
  0x19   : > { %v242_v34 = vmul.f32 14.285714, %v228_v33  ;;  %v243_v36 = vmul.f32 14.285714, %v229_v35  ;;  %v230_v37 = vld [vmem:[%s2628_s14 + $0x38] sm:$0xff]  ;;  %v231_v39 = vld [vmem:[%s2628_s14 + $0x40] sm:$0xff] }
  0x1a   : > { %v244_v38 = vmul.f32 14.285714, %v230_v37  ;;  %v245_v40 = vmul.f32 14.285714, %v231_v39  ;;  %v232_v41 = vld [vmem:[%s2628_s14 + $0x48] sm:$0xff]  ;;  %v233_v43 = vld [vmem:[%s2628_s14 + $0x50] sm:$0xff] }
  0x1b   : > { %v246_v42 = vmul.f32 14.285714, %v232_v41  ;;  %v247_v44 = vmul.f32 14.285714, %v233_v43  ;;  %v234_v45 = vld [vmem:[%s2628_s14 + $0x58] sm:$0xff]  ;;  %v235_v47 = vld [vmem:[%s2628_s14 + $0x60] sm:$0xff] }
  0x1c   : > { %510 = vperm.xlu1 %2321, %v254_v15   ;;  %504 = vperm.xlu0 %2320, %v252_v16   ;;  %v248_v46 = vmul.f32 14.285714, %v234_v45  ;;  %v249_v48 = vmul.f32 14.285714, %v235_v47  ;;  %v236_v50 = vld [vmem:[%s2628_s14 + $0x68] sm:$0xff] }
  0x1d   : > { %516 = vperm.xlu2 %2322, %v256_v17   ;;  %v250_v52 = vmul.f32 14.285714, %v236_v50 }
  0x1e   : > { %2238 = vmatmul.msk.f32.gmra.mxu1 %vm331_vm0, %v238_v18 }
  0x1f   : > { %2224 = vmatmul.msk.f32.gmra.mxu0 %vm331_vm0, %v238_v18 }
  0x20   : > { %2294 = vmatmul.msk.f32.gmra.mxu3 %vm331_vm0, %v238_v18  ;;  %2280 = vmatmul.msk.f32.gmra.mxu2 %vm331_vm0, %v238_v18 }
  0x24   : > { %522 = vperm.xlu1 %2321, %v258_v20   ;;  %519 = vperm.xlu0 %2320, %v257_v21  }
  0x25   : > { %525 = vperm.xlu2 %2322, %v259_v22  }
  0x26   : > { %2239 = vmatmul.msk.f32.gmra.mxu1 %vm331_vm0, %v239_v23 }
  0x27   : > { %2225 = vmatmul.msk.f32.gmra.mxu0 %vm331_vm0, %v239_v23 }
  0x28   : > { %2295 = vmatmul.msk.f32.gmra.mxu3 %vm331_vm0, %v239_v23  ;;  %2281 = vmatmul.msk.f32.gmra.mxu2 %vm331_vm0, %v239_v23 }
  0x2c   : > { %531 = vperm.xlu1 %2321, %v261_v25   ;;  %528 = vperm.xlu0 %2320, %v260_v26  }
  0x2d   : > { %534 = vperm.xlu2 %2322, %v262_v27  }
  0x2e   : > { %2240 = vmatmul.msk.f32.gmra.mxu1 %vm331_vm0, %v240_v28 }
  0x2f   : > { %2226 = vmatmul.msk.f32.gmra.mxu0 %vm331_vm0, %v240_v28 }
  0x30   : > { %2296 = vmatmul.msk.f32.gmra.mxu3 %vm331_vm0, %v240_v28  ;;  %2282 = vmatmul.msk.f32.gmra.mxu2 %vm331_vm0, %v240_v28 }
  0x34   : > { %540 = vperm.xlu1 %2321, %v264_v30   ;;  %537 = vperm.xlu0 %2320, %v263_v31  }
  0x36   : > { %2241 = vmatmul.msk.f32.gmra.mxu1 %vm331_vm0, %v241_v32 }
  0x37   : > { %2227 = vmatmul.msk.f32.gmra.mxu0 %vm331_vm0, %v241_v32 }
  0x38   : > { %2297 = vmatmul.msk.f32.gmra.mxu3 %vm331_vm0, %v241_v32  ;;  %2283 = vmatmul.msk.f32.gmra.mxu2 %vm331_vm0, %v241_v32 }
  0x3e   : > { %2242 = vmatmul.msk.f32.gmra.mxu1 %vm331_vm0, %v242_v34 }
  0x3f   : > { %2228 = vmatmul.msk.f32.gmra.mxu0 %vm331_vm0, %v242_v34 }
  0x40   : > { %2298 = vmatmul.msk.f32.gmra.mxu3 %vm331_vm0, %v242_v34  ;;  %2284 = vmatmul.msk.f32.gmra.mxu2 %vm331_vm0, %v242_v34 }
  0x46   : > { %2243 = vmatmul.msk.f32.gmra.mxu1 %vm331_vm0, %v243_v36 }
  0x47   : > { %2229 = vmatmul.msk.f32.gmra.mxu0 %vm331_vm0, %v243_v36 }
  0x48   : > { %2299 = vmatmul.msk.f32.gmra.mxu3 %vm331_vm0, %v243_v36  ;;  %2285 = vmatmul.msk.f32.gmra.mxu2 %vm331_vm0, %v243_v36 }
  0x4e   : > { %2244 = vmatmul.msk.f32.gmra.mxu1 %vm331_vm0, %v244_v38 }
  0x4f   : > { %2230 = vmatmul.msk.f32.gmra.mxu0 %vm331_vm0, %v244_v38 }
  0x50   : > { %2300 = vmatmul.msk.f32.gmra.mxu3 %vm331_vm0, %v244_v38  ;;  %2286 = vmatmul.msk.f32.gmra.mxu2 %vm331_vm0, %v244_v38 }
  0x56   : > { %2245 = vmatmul.msk.f32.gmra.mxu1 %vm331_vm0, %v245_v40 }
  0x57   : > { %2231 = vmatmul.msk.f32.gmra.mxu0 %vm331_vm0, %v245_v40 }
  0x58   : > { %2301 = vmatmul.msk.f32.gmra.mxu3 %vm331_vm0, %v245_v40  ;;  %2287 = vmatmul.msk.f32.gmra.mxu2 %vm331_vm0, %v245_v40  ;;  %v4252_v40 = vmov 0 }
  0x5e   : > { %2246 = vmatmul.msk.f32.gmra.mxu1 %vm331_vm0, %v246_v42 }
  0x5f   : > { %2232 = vmatmul.msk.f32.gmra.mxu0 %vm331_vm0, %v246_v42 }
  0x60   : > { %2302 = vmatmul.msk.f32.gmra.mxu3 %vm331_vm0, %v246_v42  ;;  %2288 = vmatmul.msk.f32.gmra.mxu2 %vm331_vm0, %v246_v42 }
  0x66   : > { %2247 = vmatmul.msk.f32.gmra.mxu1 %vm331_vm0, %v247_v44 }
  0x67   : > { %2233 = vmatmul.msk.f32.gmra.mxu0 %vm331_vm0, %v247_v44 }
  0x68   : > { %2303 = vmatmul.msk.f32.gmra.mxu3 %vm331_vm0, %v247_v44  ;;  %2289 = vmatmul.msk.f32.gmra.mxu2 %vm331_vm0, %v247_v44 }
  0x6e   : > { %2248 = vmatmul.msk.f32.gmra.mxu1 %vm331_vm0, %v248_v46 }
  0x6f   : > { %2234 = vmatmul.msk.f32.gmra.mxu0 %vm331_vm0, %v248_v46  ;;  %v2706_v49 = vpop.permute.xlu2 %513 }
  0x70   : > { %2304 = vmatmul.msk.f32.gmra.mxu3 %vm331_vm0, %v248_v46  ;;  %2290 = vmatmul.msk.f32.gmra.mxu2 %vm331_vm0, %v248_v46 }
  0x76   : > { %2249 = vmatmul.msk.f32.gmra.mxu1 %vm331_vm0, %v249_v48 }
  0x77   : > { %2235 = vmatmul.msk.f32.gmra.mxu0 %vm331_vm0, %v249_v48  ;;  %v2717_v55 = vpop.permute.xlu2 %516 }
  0x78   : > { %2305 = vmatmul.msk.f32.gmra.mxu3 %vm331_vm0, %v249_v48  ;;  %2291 = vmatmul.msk.f32.gmra.mxu2 %vm331_vm0, %v249_v48  ;;  %vm555_vm2 = vcmp.eq.s32.totalorder %v2717_v55, %v2724_v58  ;;  %vm4180_vm9 = vcmp.eq.s32.totalorder %v2717_v55, %v2722_v57 }
  0x79   : > { %vm2771_vm10 = vmand %vm555_vm2, %vm4233_vm1  ;;  %v2261_v8 = vsel %vm4180_vm9, 1.0, %v2556_v62 }
  0x7a   : > { %v2262_v9 = vsel %vm2771_vm10, 1.0, %v2556_v62 }
  0x7b   : > { %v1109_v12 = vadd.f32 %v2262_v9, %v2261_v8 }
  0x7e   : > { %2250 = vmatmul.msk.f32.gmra.mxu1 %vm331_vm0, %v250_v52 }
  0x7f   : > { %2236 = vmatmul.msk.f32.gmra.mxu0 %vm331_vm0, %v250_v52  ;;  %v2775_v6 = vpop.permute.xlu2 %525 }
  0x80   : > { %2306 = vmatmul.msk.f32.gmra.mxu3 %vm331_vm0, %v250_v52  ;;  %2292 = vmatmul.msk.f32.gmra.mxu2 %vm331_vm0, %v250_v52  ;;  %vm561_vm2 = vcmp.eq.s32.totalorder %v2775_v6, %v2724_v58 }
  0x86   : > { %v2727_v59 = vpop.permute.xlu1 %507  ;;  %v2729_v60 = vpop.permute.xlu0 %501 }
  0x87   : > { %vm4190_vm3 = vcmp.eq.s32.totalorder %v2727_v59, %v2722_v57  ;;  %vm549_vm4 = vcmp.eq.s32.totalorder %v2727_v59, %v2724_v58  ;;  %vm4186_vm5 = vcmp.eq.s32.totalorder %v2729_v60, %v2722_v57  ;;  %vm545_vm6 = vcmp.eq.s32.totalorder %v2729_v60, %v2724_v58  ;;  %v2836_v24 = vpop.permute.xlu2 %534 }
  0x88   : > { %vm2743_vm7 = vmand %vm549_vm4, %vm4233_vm1  ;;  %v2255_v63 = vsel %vm4190_vm3, 1.0, %v2556_v62  ;;  %v2251_v0 = vsel %vm4186_vm5, 1.0, %v2556_v62  ;;  %vm553_vm4 = vcmp.eq.s32.totalorder %v2706_v49, %v2724_v58  ;;  %4247 = vst [vmem:[#allocation7_spill] sm:$0xff] %v2836_v24 }
  0x89   : > { %v2256_v1 = vsel %vm2743_vm7, 1.0, %v2556_v62  ;;  %vm2760_vm8 = vmand %vm545_vm6, %vm4233_vm1  ;;  %vm4181_vm6 = vcmp.eq.s32.totalorder %v2775_v6, %v2722_v57 }
  0x8a   : > { %v1100_v3 = vadd.f32 %v2256_v1, %v2255_v63  ;;  %v2252_v4 = vsel %vm2760_vm8, 1.0, %v2556_v62  ;;  %vm2842_vm9 = vmand %vm553_vm4, %vm4233_vm1  ;;  %v2267_v28 = vsel %vm4181_vm6, 1.0, %v2556_v62  ;;  %v4260_v1 = vmov 0 }
  0x8b   : > { %v1094_v7 = vadd.f32 %v2252_v4, %v2251_v0  ;;  %v2260_v31 = vsel %vm2842_vm9, 1.0, %v2556_v62 }
  0x8c   : > { %1101 = vadd.xlane.f32.xlu2 %v1100_v3 }
  0x8d   : > { %1095 = vadd.xlane.f32.xlu1 %v1094_v7 }
  0x8e   : > { %v2784_v10 = vpop.permute.xlu1 %510  ;;  %v2786_v11 = vpop.permute.xlu0 %504 }
  0x8f   : > { %vm4185_vm11 = vcmp.eq.s32.totalorder %v2784_v10, %v2722_v57  ;;  %vm551_vm12 = vcmp.eq.s32.totalorder %v2784_v10, %v2724_v58  ;;  %vm4184_vm13 = vcmp.eq.s32.totalorder %v2786_v11, %v2722_v57  ;;  %vm547_vm14 = vcmp.eq.s32.totalorder %v2786_v11, %v2724_v58 }
  0x90   : > { %vm2798_vm15 = vmand %vm551_vm12, %vm4233_vm1  ;;  %v2257_v14 = vsel %vm4185_vm11, 1.0, %v2556_v62  ;;  %v2253_v15 = vsel %vm4184_vm13, 1.0, %v2556_v62 }
  0x91   : > { %v2258_v16 = vsel %vm2798_vm15, 1.0, %v2556_v62  ;;  %vm2815_vm0 = vmand %vm547_vm14, %vm4233_vm1  ;;  %vm4182_vm14 = vcmp.eq.s32.totalorder %v2706_v49, %v2722_v57 }
  0x92   : > { %v1103_v18 = vadd.f32 %v2258_v16, %v2257_v14  ;;  %v2254_v19 = vsel %vm2815_vm0, 1.0, %v2556_v62  ;;  %vm2832_vm12 = vmand %vm561_vm2, %vm4233_vm1  ;;  %v2259_v30 = vsel %vm4182_vm14, 1.0, %v2556_v62  ;;  %vm567_vm14 = vcmp.eq.s32.totalorder %v2836_v24, %v2724_v58 }
  0x93   : > { %v1097_v20 = vadd.f32 %v2254_v19, %v2253_v15  ;;  %v450_v21 = vpop.f32.mrf.mxu1  ;;  %v2268_v29 = vsel %vm2832_vm12, 1.0, %v2556_v62  ;;  %v1106_v37 = vadd.f32 %v2260_v31, %v2259_v30  ;;  %vm2893_vm13 = vmand %vm567_vm14, %vm4233_vm1 }
  0x94   : > { %1110 = vadd.xlane.f32.xlu2 %v1109_v12  ;;  %v2826_v22 = vpop.f32.mrf.mxu0  ;;  %v1118_v35 = vadd.f32 %v2268_v29, %v2267_v28  ;;  %v4253_v40 = vsel %vm2893_vm13, 4294967295, %v4252_v40  ;;  %v2274_v45 = vsel %vm2893_vm13, 1.0, %v2556_v62  ;;  %v2956_v4 = vsel %vm4233_vm1, %v450_v21, -1e+30 }
  0x95   : > { %1104 = vadd.xlane.f32.xlu1 %v1103_v18  ;;  %1098 = vadd.xlane.f32.xlu0 %v1097_v20  ;;  %4254 = vst [vmem:[#allocation8_spill] sm:$0xff] %v4253_v40  ;;  %v646_v18 = vmax.f32 %v2826_v22, %v2956_v4  ;;  %v4267_v28 = vmov 0 }
  0x96   : > { %v2846_v26 = vpop.permute.xlu1 %522  ;;  %v2848_v27 = vpop.permute.xlu0 %519 }
  0x97   : > { %vm4183_vm2 = vcmp.eq.s32.totalorder %v2848_v27, %v2722_v57  ;;  %vm557_vm4 = vcmp.eq.s32.totalorder %v2848_v27, %v2724_v58  ;;  %vm4188_vm11 = vcmp.eq.s32.totalorder %v2846_v26, %v2722_v57 }
  0x98   : > { %vm2870_vm6 = vmand %vm557_vm4, %vm4233_vm1  ;;  %v2263_v33 = vsel %vm4183_vm2, 1.0, %v2556_v62  ;;  %vm559_vm4 = vcmp.eq.s32.totalorder %v2846_v26, %v2724_v58  ;;  %vm4187_vm2 = vcmp.eq.s32.totalorder %v2836_v24, %v2722_v57  ;;  %v2265_v46 = vsel %vm4188_vm11, 1.0, %v2556_v62 }
  0x99   : > { %v2264_v34 = vsel %vm2870_vm6, 1.0, %v2556_v62  ;;  %vm2901_vm5 = vmand %vm559_vm4, %vm4233_vm1  ;;  %v2273_v44 = vsel %vm4187_vm2, 1.0, %v2556_v62 }
  0x9a   : > { %v1112_v36 = vadd.f32 %v2264_v34, %v2263_v33  ;;  %v2266_v47 = vsel %vm2901_vm5, 1.0, %v2556_v62  ;;  %v1127_v52 = vadd.f32 %v2274_v45, %v2273_v44 }
  0x9b   : > { %v2885_v38 = vpop.f32.mrf.mxu1  ;;  %v1115_v54 = vadd.f32 %v2266_v47, %v2265_v46 }
  0x9c   : > { %1119 = vadd.xlane.f32.xlu2 %v1118_v35  ;;  %v2887_v39 = vpop.f32.mrf.mxu0  ;;  %v3026_v45 = vsel %vm4233_vm1, %v2885_v38, -1e+30 }
  0x9d   : > { %1107 = vadd.xlane.f32.xlu0 %v1106_v37  ;;  %1113 = vadd.xlane.f32.xlu1 %v1112_v36  ;;  %v649_v47 = vmax.f32 %v2887_v39, %v3026_v45 }
  0x9e   : > { %v2905_v42 = vpop.permute.xlu1 %531  ;;  %v2907_v43 = vpop.permute.xlu0 %528 }
  0x9f   : > { %4257 = vst [vmem:[#allocation9_spill] sm:$0xff] %v2905_v42  ;;  %vm4189_vm14 = vcmp.eq.s32.totalorder %v2907_v43, %v2722_v57  ;;  %vm563_vm4 = vcmp.eq.s32.totalorder %v2907_v43, %v2724_v58  ;;  %vm565_vm11 = vcmp.eq.s32.totalorder %v2905_v42, %v2724_v58 }
  0xa0   : > { %vm2929_vm2 = vmand %vm563_vm4, %vm4233_vm1  ;;  %v2269_v50 = vsel %vm4189_vm14, 1.0, %v2556_v62 }
  0xa1   : > { %v2270_v51 = vsel %vm2929_vm2, 1.0, %v2556_v62  ;;  %vm2948_vm14 = vmand %vm565_vm11, %vm4233_vm1  ;;  %vm4264_vm11 = vcmp.eq.s32.totalorder %v2905_v42, %v2722_v57 }
  0xa2   : > { %v1121_v53 = vadd.f32 %v2270_v51, %v2269_v50  ;;  %v4261_v1 = vsel %vm2948_vm14, 4294967295, %v4260_v1  ;;  %v2271_v8 = vsel %vm4264_vm11, 1.0, %v2556_v62  ;;  %v2272_v9 = vsel %vm2948_vm14, 1.0, %v2556_v62 }
  0xa3   : > { %v456_v63 = vpop.f32.mrf.mxu1  ;;  %4262 = vst [vmem:[#allocation10_spill] sm:$0xff] %v4261_v1  ;;  %v1124_v19 = vadd.f32 %v2272_v9, %v2271_v8 }
  0xa4   : > { %1128 = vadd.xlane.f32.xlu2 %v1127_v52  ;;  %v2942_v0 = vpop.f32.mrf.mxu0 }
  0xa5   : > { %1116 = vadd.xlane.f32.xlu0 %v1115_v54  ;;  %1122 = vadd.xlane.f32.xlu1 %v1121_v53 }
  0xa6   : > { %v2952_v3 = vpop.permute.xlu0 %537  ;;  %v2958_v7 = vpop.permute.xlu1 %540 }
  0xa7   : > { %4263 = vst [vmem:[#allocation11_spill] sm:$0xff] %v2958_v7  ;;  %vm4192_vm3 = vcmp.eq.s32.totalorder %v2952_v3, %v2722_v57  ;;  %vm569_vm4 = vcmp.eq.s32.totalorder %v2952_v3, %v2724_v58  ;;  %vm571_vm11 = vcmp.eq.s32.totalorder %v2958_v7, %v2724_v58  ;;  %v3004_v58 = vsel %vm4233_vm1, %v456_v63, -1e+30 }
  0xa8   : > { %vm2973_vm13 = vmand %vm569_vm4, %vm4233_vm1  ;;  %v2275_v14 = vsel %vm4192_vm3, 1.0, %v2556_v62  ;;  %vm570_vm4 = vcmp.eq.s32.totalorder %v2958_v7, %v2722_v57  ;;  %v652_v35 = vmax.f32 %v2942_v0, %v3004_v58 }
  0xa9   : > { %v2276_v15 = vsel %vm2973_vm13, 1.0, %v2556_v62  ;;  %vm2994_vm3 = vmand %vm571_vm11, %vm4233_vm1  ;;  %v2277_v30 = vsel %vm570_vm4, 1.0, %v2556_v62  ;;  %vm265_vm11 = vcmask 7168  }
  0xaa   : > { %v1130_v16 = vadd.f32 %v2276_v15, %v2275_v14  ;;  %v4268_v28 = vsel %vm2994_vm3, 4294967295, %v4267_v28  ;;  %v2278_v31 = vsel %vm2994_vm3, 1.0, %v2556_v62  ;;  %296 = vst.msk [vmem:[#allocation4 + $0x10] sm:$0xff] %vm265_vm11, %v2556_v62 }
  0xab   : > { %v459_v20 = vpop.f32.mrf.mxu1  ;;  %4269 = vst [vmem:[#allocation12_spill] sm:$0xff] %v4268_v28  ;;  %v1133_v34 = vadd.f32 %v2278_v31, %v2277_v30 }
  0xac   : > { %647 = vmax.xlane.f32.xlu2 %v646_v18  ;;  %v2988_v21 = vpop.f32.mrf.mxu0  ;;  %v3000_v29 = vsel %vm4233_vm1, %v459_v20, -1e+30  ;;  %280 = vst.msk [vmem:[#allocation3] sm:$0xff] %vm265_vm11, %v2556_v62 }
  0xad   : > { %1125 = vadd.xlane.f32.xlu0 %v1124_v19  ;;  %1131 = vadd.xlane.f32.xlu1 %v1130_v16  ;;  %v655_v33 = vmax.f32 %v2988_v21, %v3000_v29  ;;  %281 = vst.msk [vmem:[#allocation3 + $0x8] sm:$0xff] %vm265_vm11, %v2556_v62 }
  0xae   : > { %282 = vst.msk [vmem:[#allocation3 + $0x10] sm:$0xff] %vm265_vm11, %v2556_v62 }
  0xaf   : > { %283 = vst.msk [vmem:[#allocation3 + $0x18] sm:$0xff] %vm265_vm11, %v2556_v62 }
  0xb0   : > { %284 = vst.msk [vmem:[#allocation3 + $0x20] sm:$0xff] %vm265_vm11, %v2556_v62 }
  0xb1   : > { %285 = vst.msk [vmem:[#allocation3 + $0x28] sm:$0xff] %vm265_vm11, %v2556_v62 }
  0xb2   : > { %286 = vst.msk [vmem:[#allocation3 + $0x30] sm:$0xff] %vm265_vm11, %v2556_v62 }
  0xb3   : > { %v462_v36 = vpop.f32.mrf.mxu1  ;;  %287 = vst.msk [vmem:[#allocation3 + $0x38] sm:$0xff] %vm265_vm11, %v2556_v62 }
  0xb4   : > { %656 = vmax.xlane.f32.xlu2 %v655_v33  ;;  %v3017_v37 = vpop.f32.mrf.mxu0  ;;  %v3021_v44 = vsel %vm4233_vm1, %v462_v36, -1e+30  ;;  %288 = vst.msk [vmem:[#allocation3 + $0x40] sm:$0xff] %vm265_vm11, %v2556_v62 }
  0xb5   : > { %1134 = vadd.xlane.f32.xlu0 %v1133_v34  ;;  %653 = vmax.xlane.f32.xlu1 %v652_v35  ;;  %v658_v46 = vmax.f32 %v3017_v37, %v3021_v44  ;;  %289 = vst.msk [vmem:[#allocation3 + $0x48] sm:$0xff] %vm265_vm11, %v2556_v62 }
  0xb6   : > { %290 = vst.msk [vmem:[#allocation3 + $0x50] sm:$0xff] %vm265_vm11, %v2556_v62 }
  0xb7   : > { %291 = vst.msk [vmem:[#allocation3 + $0x58] sm:$0xff] %vm265_vm11, %v2556_v62 }
  0xb8   : > { %292 = vst.msk [vmem:[#allocation3 + $0x60] sm:$0xff] %vm265_vm11, %v2556_v62 }
  0xb9   : > { %293 = vst.msk [vmem:[#allocation3 + $0x68] sm:$0xff] %vm265_vm11, %v2556_v62 }
  0xba   : > { %294 = vst.msk [vmem:[#allocation4] sm:$0xff] %vm265_vm11, %v2556_v62 }
  0xbb   : > { %v465_v50 = vpop.f32.mrf.mxu1  ;;  %295 = vst.msk [vmem:[#allocation4 + $0x8] sm:$0xff] %vm265_vm11, %v2556_v62 }
  0xbc   : > { %659 = vmax.xlane.f32.xlu2 %v658_v46  ;;  %v3032_v51 = vpop.f32.mrf.mxu0  ;;  %v3036_v52 = vsel %vm4233_vm1, %v465_v50, -1e+30  ;;  %297 = vst.msk [vmem:[#allocation4 + $0x18] sm:$0xff] %vm265_vm11, %v2556_v62 }
  0xbd   : > { %650 = vmax.xlane.f32.xlu0 %v649_v47  ;;  %v661_v53 = vmax.f32 %v3032_v51, %v3036_v52  ;;  %298 = vst.msk [vmem:[#allocation4 + $0x20] sm:$0xff] %vm265_vm11, %v2556_v62 }
  0xbe   : > { %299 = vst.msk [vmem:[#allocation4 + $0x28] sm:$0xff] %vm265_vm11, %v2556_v62 }
  0xbf   : > { %300 = vst.msk [vmem:[#allocation4 + $0x30] sm:$0xff] %vm265_vm11, %v2556_v62 }
  0xc0   : > { %301 = vst.msk [vmem:[#allocation4 + $0x38] sm:$0xff] %vm265_vm11, %v2556_v62 }
  0xc1   : > { %302 = vst.msk [vmem:[#allocation4 + $0x40] sm:$0xff] %vm265_vm11, %v2556_v62 }
  0xc2   : > { %303 = vst.msk [vmem:[#allocation4 + $0x48] sm:$0xff] %vm265_vm11, %v2556_v62 }
  0xc3   : > { %v468_v38 = vpop.f32.mrf.mxu1  ;;  %304 = vst.msk [vmem:[#allocation4 + $0x50] sm:$0xff] %vm265_vm11, %v2556_v62 }
  0xc4   : > { %v3040_v54 = vpop.f32.mrf.mxu0  ;;  %v3044_v63 = vsel %vm4233_vm1, %v468_v38, -1e+30  ;;  %305 = vst.msk [vmem:[#allocation4 + $0x58] sm:$0xff] %vm265_vm11, %v2556_v62  ;;  %v1028_v24 = vld [vmem:[#allocation4 + $0x20] sm:$0xff] }
  0xc5   : > { %662 = vmax.xlane.f32.xlu0 %v661_v53  ;;  %v664_v8 = vmax.f32 %v3040_v54, %v3044_v63  ;;  %306 = vst.msk [vmem:[#allocation4 + $0x60] sm:$0xff] %vm265_vm11, %v2556_v62  ;;  %v1029_v7 = vld [vmem:[#allocation4 + $0x28] sm:$0xff] }
  0xc6   : > { %307 = vst.msk [vmem:[#allocation4 + $0x68] sm:$0xff] %vm265_vm11, %v2556_v62  ;;  %v1030_v40 = vld [vmem:[#allocation4 + $0x30] sm:$0xff] }
  0xc7   : > { %665 = vmax.xlane.f32.xlu1 %v664_v8  ;;  %308 = vst.msk [vmem:[#allocation5] sm:$0xff] %vm265_vm11, %v2556_v62 }
  0xc8   : > { %309 = vst.msk [vmem:[#allocation5 + $0x8] sm:$0xff] %vm265_vm11, %v2556_v62 }
  0xc9   : > { %310 = vst.msk [vmem:[#allocation5 + $0x10] sm:$0xff] %vm265_vm11, %v2556_v62 }
  0xca   : > { %311 = vst.msk [vmem:[#allocation5 + $0x18] sm:$0xff] %vm265_vm11, %v2556_v62 }
  0xcb   : > { %v471_v9 = vpop.f32.mrf.mxu1  ;;  %312 = vst.msk [vmem:[#allocation5 + $0x20] sm:$0xff] %vm265_vm11, %v2556_v62 }
  0xcc   : > { %v3048_v14 = vpop.f32.mrf.mxu0  ;;  %v3052_v15 = vsel %vm4233_vm1, %v471_v9, -1e+30  ;;  %313 = vst.msk [vmem:[#allocation5 + $0x28] sm:$0xff] %vm265_vm11, %v2556_v62 }
  0xcd   : > { %v667_v16 = vmax.f32 %v3048_v14, %v3052_v15  ;;  %314 = vst.msk [vmem:[#allocation5 + $0x30] sm:$0xff] %vm265_vm11, %v2556_v62 }
  0xce   : > { %315 = vst.msk [vmem:[#allocation5 + $0x38] sm:$0xff] %vm265_vm11, %v2556_v62 }
  0xcf   : > { %668 = vmax.xlane.f32.xlu2 %v667_v16  ;;  %316 = vst.msk [vmem:[#allocation5 + $0x40] sm:$0xff] %vm265_vm11, %v2556_v62 }
  0xd0   : > { %317 = vst.msk [vmem:[#allocation5 + $0x48] sm:$0xff] %vm265_vm11, %v2556_v62 }
  0xd1   : > { %318 = vst.msk [vmem:[#allocation5 + $0x50] sm:$0xff] %vm265_vm11, %v2556_v62 }
  0xd2   : > { %319 = vst.msk [vmem:[#allocation5 + $0x58] sm:$0xff] %vm265_vm11, %v2556_v62 }
  0xd3   : > { %v474_v18 = vpop.f32.mrf.mxu1  ;;  %320 = vst.msk [vmem:[#allocation5 + $0x60] sm:$0xff] %vm265_vm11, %v2556_v62 }
  0xd4   : > { %v3056_v19 = vpop.f32.mrf.mxu0  ;;  %v3060_v20 = vsel %vm4233_vm1, %v474_v18, -1e+30  ;;  %321 = vst.msk [vmem:[#allocation5 + $0x68] sm:$0xff] %vm265_vm11, %v2556_v62 }
  0xd5   : > { %v670_v30 = vmax.f32 %v3056_v19, %v3060_v20 }
  0xd7   : > { %671 = vmax.xlane.f32.xlu0 %v670_v30 }
  0xdb   : > { %v477_v31 = vpop.f32.mrf.mxu1 }
  0xdc   : > { %v3070_v33 = vpop.f32.mrf.mxu0  ;;  %v3076_v34 = vsel %vm4233_vm1, %v477_v31, -1e+30 }
  0xdd   : > { %v673_v35 = vmax.f32 %v3070_v33, %v3076_v34 }
  0xdf   : > { %674 = vmax.xlane.f32.xlu1 %v673_v35 }
  0xe3   : > { %v480_v36 = vpop.f32.mrf.mxu1 }
  0xe4   : > { %v3094_v46 = vpop.f32.mrf.mxu0  ;;  %v3100_v47 = vsel %vm4233_vm1, %v480_v36, -1e+30 }
  0xe5   : > { %v676_v50 = vmax.f32 %v3094_v46, %v3100_v47 }
  0xe7   : > { %677 = vmax.xlane.f32.xlu2 %v676_v50 }
  0xeb   : > { %v483_v53 = vpop.f32.mrf.mxu1 }
  0xec   : > { %v3118_v38 = vpop.f32.mrf.mxu0  ;;  %v3124_v8 = vsel %vm4233_vm1, %v483_v53, -1e+30  ;;  %v1026_v53 = vld [vmem:[#allocation4 + $0x10] sm:$0xff] }
  0xed   : > { %4270 = vst [vmem:[#allocation13_spill] sm:$0xff] %v3124_v8  ;;  %v679_v9 = vmax.f32 %v3118_v38, %v3124_v8 }
  0xef   : > { %680 = vmax.xlane.f32.xlu0 %v679_v9 }
  0xf3   : > { %v486_v16 = vpop.f32.mrf.mxu1 }
  0xf4   : > { %v3142_v18 = vpop.f32.mrf.mxu0  ;;  %v3148_v30 = vsel %vm4233_vm1, %v486_v16, -1e+30  ;;  %v1024_v16 = vld [vmem:[#allocation4] sm:$0xff] }
  0xf5   : > { %v682_v31 = vmax.f32 %v3142_v18, %v3148_v30 }
  0xf7   : > { %683 = vmax.xlane.f32.xlu1 %v682_v31 }
  0xfb   : > { %v489_v35 = vpop.f32.mrf.mxu1 }
  0xfc   : > { %v3166_v36 = vpop.f32.mrf.mxu0  ;;  %v3172_v50 = vsel %vm4233_vm1, %v489_v35, -1e+30  ;;  %vm4299_vm1 = vcmp.eq.s32.totalorder %v2727_v59, %v2722_v57 }
  0xfd   : > { %4271 = vst [vmem:[#allocation14_spill] sm:$0xff] %v3166_v36  ;;  %v685_v9 = vmax.f32 %v3166_v36, %v3172_v50 }
  0xfe   : > { %4272 = vst [vmem:[#allocation15_spill] sm:$0xff] %v3172_v50  ;;  %v2557_v50 = vmov -1e+30  }
  0xff   : > { %v1102_v31 = vpop.xlane.xlu2 %1101  ;;  %686 = vmax.xlane.f32.xlu2 %v685_v9  ;;  %266 = vst.msk [vmem:[#allocation2] sm:$0xff] %vm265_vm11, %v2557_v50 }
 0x100   : > { %v1138_v28 = vadd.f32 %v1102_v31, %v1026_v53  ;;  %v1096_v35 = vpop.xlane.xlu1 %1095  ;;  %v1027_v53 = vld [vmem:[#allocation4 + $0x18] sm:$0xff]  ;;  %v1025_v31 = vld [vmem:[#allocation4 + $0x8] sm:$0xff]  ;;  %267 = vst.msk [vmem:[#allocation2 + $0x8] sm:$0xff] %vm265_vm11, %v2557_v50 }
 0x101   : > { %v1136_v56 = vadd.f32 %v1096_v35, %v1024_v16  ;;  %268 = vst.msk [vmem:[#allocation2 + $0x10] sm:$0xff] %vm265_vm11, %v2557_v50 }
 0x102   : > { %1152 = vst.msk [vmem:[#allocation4 + $0x10] sm:$0xff] %vm265_vm11, %v1138_v28 }
 0x103   : > { %1150 = vst.msk [vmem:[#allocation4] sm:$0xff] %vm265_vm11, %v1136_v56  ;;  %v1032_v56 = vld [vmem:[#allocation4 + $0x40] sm:$0xff] }
 0x104   : > { %269 = vst.msk [vmem:[#allocation2 + $0x18] sm:$0xff] %vm265_vm11, %v2557_v50 }
 0x105   : > { %270 = vst.msk [vmem:[#allocation2 + $0x20] sm:$0xff] %vm265_vm11, %v2557_v50 }
 0x106   : > { %271 = vst.msk [vmem:[#allocation2 + $0x28] sm:$0xff] %vm265_vm11, %v2557_v50 }
 0x107   : > { %v1111_v9 = vpop.xlane.xlu2 %1110  ;;  %272 = vst.msk [vmem:[#allocation2 + $0x30] sm:$0xff] %vm265_vm11, %v2557_v50 }
 0x108   : > { %v1141_v36 = vadd.f32 %v1111_v9, %v1029_v7  ;;  %v1105_v16 = vpop.xlane.xlu1 %1104  ;;  %v1099_v35 = vpop.xlane.xlu0 %1098  ;;  %273 = vst.msk [vmem:[#allocation2 + $0x38] sm:$0xff] %vm265_vm11, %v2557_v50 }
 0x109   : > { %v1139_v28 = vadd.f32 %v1105_v16, %v1027_v53  ;;  %v1137_v62 = vadd.f32 %v1099_v35, %v1025_v31  ;;  %274 = vst.msk [vmem:[#allocation2 + $0x40] sm:$0xff] %vm265_vm11, %v2557_v50  ;;  %v1035_v35 = vld [vmem:[#allocation4 + $0x58] sm:$0xff] }
 0x10a   : > { %1155 = vst.msk [vmem:[#allocation4 + $0x28] sm:$0xff] %vm265_vm11, %v1141_v36 }
 0x10b   : > { %1153 = vst.msk [vmem:[#allocation4 + $0x18] sm:$0xff] %vm265_vm11, %v1139_v28  ;;  %v1033_v28 = vld [vmem:[#allocation4 + $0x48] sm:$0xff] }
 0x10c   : > { %1151 = vst.msk [vmem:[#allocation4 + $0x8] sm:$0xff] %vm265_vm11, %v1137_v62  ;;  %v1031_v62 = vld [vmem:[#allocation4 + $0x38] sm:$0xff] }
 0x10d   : > { %275 = vst.msk [vmem:[#allocation2 + $0x48] sm:$0xff] %vm265_vm11, %v2557_v50 }
 0x10e   : > { %276 = vst.msk [vmem:[#allocation2 + $0x50] sm:$0xff] %vm265_vm11, %v2557_v50 }
 0x10f   : > { %v1120_v7 = vpop.xlane.xlu2 %1119  ;;  %277 = vst.msk [vmem:[#allocation2 + $0x58] sm:$0xff] %vm265_vm11, %v2557_v50 }
 0x110   : > { %v1144_v53 = vadd.f32 %v1120_v7, %v1032_v56  ;;  %v1114_v31 = vpop.xlane.xlu1 %1113  ;;  %v1108_v9 = vpop.xlane.xlu0 %1107  ;;  %278 = vst.msk [vmem:[#allocation2 + $0x60] sm:$0xff] %vm265_vm11, %v2557_v50 }
 0x111   : > { %v1142_v36 = vadd.f32 %v1114_v31, %v1030_v40  ;;  %v1140_v16 = vadd.f32 %v1108_v9, %v1028_v24  ;;  %279 = vst.msk [vmem:[#allocation2 + $0x68] sm:$0xff] %vm265_vm11, %v2557_v50  ;;  %v3213_v9 = vld [vmem:[#allocation2] sm:$0xff] }
 0x112   : > { %1158 = vst.msk [vmem:[#allocation4 + $0x40] sm:$0xff] %vm265_vm11, %v1144_v53 }
 0x113   : > { %1156 = vst.msk [vmem:[#allocation4 + $0x30] sm:$0xff] %vm265_vm11, %v1142_v36  ;;  %v1036_v36 = vld [vmem:[#allocation4 + $0x60] sm:$0xff] }
 0x114   : > { %1154 = vst.msk [vmem:[#allocation4 + $0x20] sm:$0xff] %vm265_vm11, %v1140_v16  ;;  %v1034_v16 = vld [vmem:[#allocation4 + $0x50] sm:$0xff] }
 0x117   : > { %v1129_v56 = vpop.xlane.xlu2 %1128 }
 0x118   : > { %v1147_v40 = vadd.f32 %v1129_v56, %v1035_v35  ;;  %v1123_v24 = vpop.xlane.xlu1 %1122  ;;  %v1117_v7 = vpop.xlane.xlu0 %1116 }
 0x119   : > { %v1145_v53 = vadd.f32 %v1123_v24, %v1033_v28  ;;  %v1143_v31 = vadd.f32 %v1117_v7, %v1031_v62  ;;  %v3225_v62 = vld [vmem:[#allocation2 + $0x18] sm:$0xff]  ;;  %v3227_v24 = vld [vmem:[#allocation2 + $0x10] sm:$0xff] }
 0x11a   : > { %1161 = vst.msk [vmem:[#allocation4 + $0x58] sm:$0xff] %vm265_vm11, %v1147_v40  ;;  %v1037_v40 = vld [vmem:[#allocation4 + $0x68] sm:$0xff] }
 0x11b   : > { %1159 = vst.msk [vmem:[#allocation4 + $0x48] sm:$0xff] %vm265_vm11, %v1145_v53 }
 0x11c   : > { %1157 = vst.msk [vmem:[#allocation4 + $0x38] sm:$0xff] %vm265_vm11, %v1143_v31 }
 0x11d   : > { %4274 = vst [vmem:[#allocation17_spill] sm:$0xff] %v3225_v62 }
 0x11f   : > { %v648_v1 = vpop.xlane.xlu2 %647 }
 0x120   : > { %v1132_v42 = vpop.xlane.xlu1 %1131  ;;  %v1126_v8 = vpop.xlane.xlu0 %1125  ;;  %v3216_v35 = vmax.f32 %v3213_v9, %v648_v1 }
 0x121   : > { %v1148_v56 = vadd.f32 %v1132_v42, %v1036_v36  ;;  %v1146_v50 = vadd.f32 %v1126_v8, %v1034_v16 }
 0x122   : > { %4273 = vst [vmem:[#allocation16_spill] sm:$0xff] %v3216_v35  ;;  %704 = vperm.xlu0 %2320, %v3216_v35  }
 0x123   : > { %1164 = vst.msk [vmem:[#allocation2] sm:$0xff] %vm265_vm11, %v3216_v35 }
 0x124   : > { %1162 = vst.msk [vmem:[#allocation4 + $0x60] sm:$0xff] %vm265_vm11, %v1148_v56  ;;  %v3270_v56 = vld [vmem:[#allocation2 + $0x30] sm:$0xff] }
 0x125   : > { %1160 = vst.msk [vmem:[#allocation4 + $0x50] sm:$0xff] %vm265_vm11, %v1146_v50  ;;  %v3245_v50 = vld [vmem:[#allocation2 + $0x20] sm:$0xff] }
 0x126   : > { %4276 = vst [vmem:[#allocation19_spill] sm:$0xff] %v3245_v50 }
 0x127   : > { %v657_v1 = vpop.xlane.xlu2 %656  ;;  %4282 = vst [vmem:[#allocation25_spill] sm:$0xff] %v3270_v56 }
 0x128   : > { %v1135_v42 = vpop.xlane.xlu0 %1134  ;;  %v654_v8 = vpop.xlane.xlu1 %653  ;;  %v3230_v7 = vmax.f32 %v3225_v62, %v657_v1 }
 0x129   : > { %v1149_v53 = vadd.f32 %v1135_v42, %v1037_v40  ;;  %v3233_v31 = vmax.f32 %v3227_v24, %v654_v8  ;;  %v3247_v40 = vld [vmem:[#allocation2 + $0x8] sm:$0xff] }
 0x12a   : > { %4275 = vst [vmem:[#allocation18_spill] sm:$0xff] %v3230_v7  ;;  %v1178_v36 = vld [vmem:[#allocation2] sm:$0xff]  ;;  %719 = vperm.xlu0 %2320, %v3230_v7  }
 0x12b   : > { %1167 = vst.msk [vmem:[#allocation2 + $0x18] sm:$0xff] %vm265_vm11, %v3230_v7  ;;  %1421 = vperm.xlu2 %2322, %v1178_v36  }
 0x12c   : > { %1163 = vst.msk [vmem:[#allocation4 + $0x68] sm:$0xff] %vm265_vm11, %v1149_v53 }
 0x12d   : > { %1166 = vst.msk [vmem:[#allocation2 + $0x10] sm:$0xff] %vm265_vm11, %v3233_v31 }
 0x12e   : > { %4277 = vst [vmem:[#allocation20_spill] sm:$0xff] %v3247_v40 }
 0x12f   : > { %v660_v1 = vpop.xlane.xlu2 %659 }
 0x130   : > { %v651_v42 = vpop.xlane.xlu0 %650  ;;  %v3250_v8 = vmax.f32 %v3245_v50, %v660_v1  ;;  %v3265_v1 = vld [vmem:[#allocation2 + $0x28] sm:$0xff] }
 0x131   : > { %v3253_v16 = vmax.f32 %v3247_v40, %v651_v42  ;;  %4280 = vst [vmem:[#allocation23_spill] sm:$0xff] %v3265_v1 }
 0x132   : > { %4278 = vst [vmem:[#allocation21_spill] sm:$0xff] %v3250_v8  ;;  %v1181_v50 = vld [vmem:[#allocation2 + $0x18] sm:$0xff] }
 0x133   : > { %4279 = vst [vmem:[#allocation22_spill] sm:$0xff] %v3253_v16  ;;  %714 = vperm.xlu2 %2322, %v3233_v31   ;;  %709 = vperm.xlu1 %2321, %v3253_v16  }
 0x134   : > { %1168 = vst.msk [vmem:[#allocation2 + $0x20] sm:$0xff] %vm265_vm11, %v3250_v8  ;;  %v1180_v28 = vld [vmem:[#allocation2 + $0x10] sm:$0xff] }
 0x135   : > { %1165 = vst.msk [vmem:[#allocation2 + $0x8] sm:$0xff] %vm265_vm11, %v3253_v16  ;;  %1431 = vperm.xlu0 %2320, %v1180_v28  }
 0x138   : > { %v663_v42 = vpop.xlane.xlu0 %662 }
 0x139   : > { %v3268_v53 = vmax.f32 %v3265_v1, %v663_v42  ;;  %v3295_v42 = vld [vmem:[#allocation2 + $0x40] sm:$0xff] }
 0x13a   : > { %v666_v40 = vpop.xlane.xlu1 %665  ;;  %4286 = vst [vmem:[#allocation29_spill] sm:$0xff] %v3295_v42 }
 0x13b   : > { %4281 = vst [vmem:[#allocation24_spill] sm:$0xff] %v3268_v53  ;;  %1436 = vperm.xlu2 %2322, %v1181_v50   ;;  %v3277_v28 = vmax.f32 %v3270_v56, %v666_v40  ;;  %v3284_v50 = vld [vmem:[#allocation2 + $0x38] sm:$0xff]  ;;  %v1182_v1 = vld [vmem:[#allocation2 + $0x20] sm:$0xff] }
 0x13c   : > { %v1179_v7 = vld [vmem:[#allocation2 + $0x8] sm:$0xff]  ;;  %1169 = vst.msk [vmem:[#allocation2 + $0x28] sm:$0xff] %vm265_vm11, %v3268_v53 }
 0x13d   : > { %1426 = vperm.xlu1 %2321, %v1179_v7   ;;  %4283 = vst [vmem:[#allocation26_spill] sm:$0xff] %v3277_v28  ;;  %729 = vperm.xlu0 %2320, %v3268_v53  }
 0x13e   : > { %1170 = vst.msk [vmem:[#allocation2 + $0x30] sm:$0xff] %vm265_vm11, %v3277_v28 }
 0x13f   : > { %4284 = vst [vmem:[#allocation27_spill] sm:$0xff] %v3284_v50 }
 0x142   : > { %v669_v36 = vpop.xlane.xlu2 %668 }
 0x143   : > { %734 = vperm.xlu2 %2322, %v3277_v28   ;;  %v3289_v7 = vmax.f32 %v3284_v50, %v669_v36  ;;  %v1183_v56 = vld [vmem:[#allocation2 + $0x28] sm:$0xff]  ;;  %v3316_v36 = vld [vmem:[#allocation2 + $0x50] sm:$0xff] }
 0x144   : > { %4290 = vst [vmem:[#allocation33_spill] sm:$0xff] %v3316_v36 }
 0x145   : > { %724 = vperm.xlu1 %2321, %v3250_v8   ;;  %4285 = vst [vmem:[#allocation28_spill] sm:$0xff] %v3289_v7  ;;  %1441 = vperm.xlu0 %2320, %v1182_v1   ;;  %v1184_v53 = vld [vmem:[#allocation2 + $0x30] sm:$0xff]  ;;  %v3305_v1 = vld [vmem:[#allocation2 + $0x48] sm:$0xff] }
 0x146   : > { %1171 = vst.msk [vmem:[#allocation2 + $0x38] sm:$0xff] %vm265_vm11, %v3289_v7 }
 0x147   : > { %4288 = vst [vmem:[#allocation31_spill] sm:$0xff] %v3305_v1 }
 0x14a   : > { %v672_v28 = vpop.xlane.xlu0 %671 }
 0x14b   : > { %1451 = vperm.xlu2 %2322, %v1184_v53   ;;  %v3298_v16 = vmax.f32 %v3295_v42, %v672_v28  ;;  %v3325_v28 = vld [vmem:[#allocation2 + $0x58] sm:$0xff] }
 0x14c   : > { %4292 = vst [vmem:[#allocation35_spill] sm:$0xff] %v3325_v28 }
 0x14d   : > { %1446 = vperm.xlu1 %2321, %v1183_v56   ;;  %4287 = vst [vmem:[#allocation30_spill] sm:$0xff] %v3298_v16  ;;  %744 = vperm.xlu0 %2320, %v3298_v16   ;;  %v1185_v56 = vld [vmem:[#allocation2 + $0x38] sm:$0xff] }
 0x14e   : > { %1172 = vst.msk [vmem:[#allocation2 + $0x40] sm:$0xff] %vm265_vm11, %v3298_v16 }
 0x152   : > { %v675_v40 = vpop.xlane.xlu1 %674 }
 0x153   : > { %v3309_v53 = vmax.f32 %v3305_v1, %v675_v40 }
 0x155   : > { %739 = vperm.xlu1 %2321, %v3289_v7   ;;  %4289 = vst [vmem:[#allocation32_spill] sm:$0xff] %v3309_v53  ;;  %1456 = vperm.xlu0 %2320, %v1185_v56   ;;  %v1186_v50 = vld [vmem:[#allocation2 + $0x40] sm:$0xff] }
 0x156   : > { %1173 = vst.msk [vmem:[#allocation2 + $0x48] sm:$0xff] %vm265_vm11, %v3309_v53  ;;  %749 = vperm.xlu2 %2322, %v3309_v53  }
 0x15a   : > { %v678_v16 = vpop.xlane.xlu2 %677 }
 0x15b   : > { %v3319_v7 = vmax.f32 %v3316_v36, %v678_v16  ;;  %v3346_v16 = vld [vmem:[#allocation2 + $0x68] sm:$0xff] }
 0x15c   : > { %4296 = vst [vmem:[#allocation39_spill] sm:$0xff] %v3346_v16 }
 0x15d   : > { %1461 = vperm.xlu1 %2321, %v1186_v50   ;;  %4291 = vst [vmem:[#allocation34_spill] sm:$0xff] %v3319_v7  ;;  %v1187_v40 = vld [vmem:[#allocation2 + $0x48] sm:$0xff]  ;;  %v3336_v50 = vld [vmem:[#allocation2 + $0x60] sm:$0xff] }
 0x15e   : > { %1174 = vst.msk [vmem:[#allocation2 + $0x50] sm:$0xff] %vm265_vm11, %v3319_v7  ;;  %1466 = vperm.xlu2 %2322, %v1187_v40  }
 0x15f   : > { %4294 = vst [vmem:[#allocation37_spill] sm:$0xff] %v3336_v50 }
 0x162   : > { %v681_v56 = vpop.xlane.xlu0 %680 }
 0x163   : > { %v3329_v8 = vmax.f32 %v3325_v28, %v681_v56 }
 0x165   : > { %754 = vperm.xlu1 %2321, %v3319_v7   ;;  %4293 = vst [vmem:[#allocation36_spill] sm:$0xff] %v3329_v8  ;;  %759 = vperm.xlu0 %2320, %v3329_v8   ;;  %v1188_v36 = vld [vmem:[#allocation2 + $0x50] sm:$0xff] }
 0x166   : > { %1175 = vst.msk [vmem:[#allocation2 + $0x58] sm:$0xff] %vm265_vm11, %v3329_v8 }
 0x16a   : > { %v684_v42 = vpop.xlane.xlu1 %683 }
 0x16b   : > { %v3339_v40 = vmax.f32 %v3336_v50, %v684_v42 }
 0x16d   : > { %4295 = vst [vmem:[#allocation38_spill] sm:$0xff] %v3339_v40  ;;  %v1189_v53 = vld [vmem:[#allocation2 + $0x58] sm:$0xff]  ;;  %1471 = vperm.xlu0 %2320, %v1188_v36   ;;  %764 = vperm.xlu2 %2322, %v3339_v40  }
 0x16e   : > { %1176 = vst.msk [vmem:[#allocation2 + $0x60] sm:$0xff] %vm265_vm11, %v3339_v40  ;;  %1476 = vperm.xlu1 %2321, %v1189_v53  }
 0x172   : > { %v687_v8 = vpop.xlane.xlu2 %686 }
 0x173   : > { %v3349_v28 = vmax.f32 %v3346_v16, %v687_v8 }
 0x175   : > { %4297 = vst [vmem:[#allocation40_spill] sm:$0xff] %v3349_v28  ;;  %v1190_v42 = vld [vmem:[#allocation2 + $0x60] sm:$0xff] }
 0x176   : > { %1177 = vst.msk [vmem:[#allocation2 + $0x68] sm:$0xff] %vm265_vm11, %v3349_v28  ;;  %769 = vperm.xlu1 %2321, %v3349_v28   ;;  %1481 = vperm.xlu2 %2322, %v1190_v42  }
 0x17d   : > { %v1191_v36 = vld [vmem:[#allocation2 + $0x68] sm:$0xff] }
 0x17e   : > { %1486 = vperm.xlu0 %2320, %v1191_v36  }
 0x185   : > { %v3356_v53 = vpop.permute.xlu2 %1421 }
 0x186   : > { %4298 = vst [vmem:[#allocation41_spill] sm:$0xff] %v3356_v53 }
 0x18d   : > { %v715_v56 = vpop.permute.xlu2 %714 }
 0x18e   : > { %v776_v40 = vsub.f32 %v2942_v0, %v715_v56  ;;  %v777_v8 = vsub.f32 %v3004_v58, %v715_v56 }
 0x190   : > { %v808_v50 = vmul.f32 1.442695, %v776_v40  ;;  %v810_v1 = vmul.f32 1.442695, %v777_v8 }
 0x192   : > { %2323 = vpow2.f32 %v808_v50 }
 0x193   : > { %2325 = vpow2.f32 %v810_v1 }
 0x194   : > { %v705_v7 = vpop.permute.xlu0 %704 }
 0x195   : > { %v3360_v16 = vpop.permute.xlu2 %1436  ;;  %v772_v62 = vsub.f32 %v2826_v22, %v705_v7  ;;  %v773_v42 = vsub.f32 %v2956_v4, %v705_v7 }
 0x197   : > { %v800_v36 = vmul.f32 1.442695, %v772_v62  ;;  %v802_v35 = vmul.f32 1.442695, %v773_v42 }
 0x198   : > { %v2324_v28 = vpop.eup %2323 }
 0x199   : > { %v2326_v53 = vpop.eup %2325  ;;  %2327 = vpow2.f32 %v800_v36  ;;  %v930_v0 = vsel %vm4299_vm1, 0.0, %v2324_v28  ;;  %vm4300_vm1 = vcmp.eq.s32.totalorder %v2729_v60, %v2722_v57 }
 0x19a   : > { %2329 = vpow2.f32 %v802_v35  ;;  %v931_v58 = vsel %vm2743_vm7, 0.0, %v2326_v53  ;;  %vm4301_vm7 = vcmp.eq.s32.totalorder %v2784_v10, %v2722_v57 }
 0x19b   : > { %v960_v4 = vadd.f32 %v931_v58, %v930_v0 }
 0x19c   : > { %v720_v1 = vpop.permute.xlu0 %719 }
 0x19d   : > { %v778_v50 = vsub.f32 %v2988_v21, %v720_v1  ;;  %v779_v22 = vsub.f32 %v3000_v29, %v720_v1  ;;  %v735_v40 = vpop.permute.xlu2 %734 }
 0x19e   : > { %v784_v35 = vsub.f32 %v3040_v54, %v735_v40  ;;  %v785_v28 = vsub.f32 %v3044_v63, %v735_v40 }
 0x19f   : > { %v2328_v7 = vpop.eup %2327  ;;  %v812_v62 = vmul.f32 1.442695, %v778_v50  ;;  %v814_v56 = vmul.f32 1.442695, %v779_v22 }
 0x1a0   : > { %v2330_v8 = vpop.eup %2329  ;;  %961 = vadd.xlane.f32.xlu1 %v960_v4  ;;  %v926_v61 = vsel %vm4300_vm1, 0.0, %v2328_v7  ;;  %v824_v29 = vmul.f32 1.442695, %v784_v35  ;;  %v826_v53 = vmul.f32 1.442695, %v785_v28 }
 0x1a1   : > { %2331 = vpow2.f32 %v812_v62  ;;  %v927_v21 = vsel %vm2760_vm8, 0.0, %v2330_v8  ;;  %vm4302_vm8 = vcmp.eq.s32.totalorder %v2786_v11, %v2722_v57 }
 0x1a2   : > { %2333 = vpow2.f32 %v814_v56  ;;  %v954_v58 = vadd.f32 %v927_v21, %v926_v61 }
 0x1a3   : > { %2335 = vpow2.f32 %v824_v29 }
 0x1a4   : > { %2337 = vpow2.f32 %v826_v53 }
 0x1a5   : > { %v710_v42 = vpop.permute.xlu1 %709  ;;  %v3382_v22 = vpop.permute.xlu2 %1451 }
 0x1a6   : > { %v774_v0 = vsub.f32 %v2887_v39, %v710_v42  ;;  %v775_v54 = vsub.f32 %v3026_v45, %v710_v42 }
 0x1a7   : > { %v3378_v36 = vpop.permute.xlu0 %1431  ;;  %v2332_v1 = vpop.eup %2331 }
 0x1a8   : > { %v2334_v63 = vpop.eup %2333  ;;  %v804_v50 = vmul.f32 1.442695, %v774_v0  ;;  %955 = vadd.xlane.f32.xlu0 %v954_v58  ;;  %v806_v2 = vmul.f32 1.442695, %v775_v54  ;;  %v932_v40 = vsel %vm4301_vm7, 0.0, %v2332_v1 }
 0x1a9   : > { %v933_v39 = vsel %vm2798_vm15, 0.0, %v2334_v63  ;;  %v2336_v4 = vpop.eup %2335  ;;  %vm4303_vm15 = vcmp.eq.s32.totalorder %v2848_v27, %v2722_v57 }
 0x1aa   : > { %2339 = vpow2.f32 %v804_v50  ;;  %v963_v62 = vadd.f32 %v933_v39, %v932_v40  ;;  %v2338_v56 = vpop.eup %2337  ;;  %v938_v0 = vsel %vm4303_vm15, 0.0, %v2336_v4 }
 0x1ab   : > { %2341 = vpow2.f32 %v806_v2  ;;  %v939_v58 = vsel %vm2870_vm6, 0.0, %v2338_v56  ;;  %vm4305_vm6 = vcmp.eq.s32.totalorder %v2907_v43, %v2722_v57 }
 0x1ac   : > { %v972_v2 = vadd.f32 %v939_v58, %v938_v0 }
 0x1af   : > { %v3389_v45 = vpop.permute.xlu1 %1426  ;;  %v730_v7 = vpop.permute.xlu0 %729 }
 0x1b0   : > { %v782_v8 = vsub.f32 %v3032_v51, %v730_v7  ;;  %v783_v35 = vsub.f32 %v3036_v52, %v730_v7  ;;  %v2340_v28 = vpop.eup %2339  ;;  %964 = vadd.xlane.f32.xlu0 %v963_v62  ;;  %v750_v61 = vpop.permute.xlu2 %749 }
 0x1b1   : > { %v790_v53 = vsub.f32 %v3070_v33, %v750_v61  ;;  %v791_v13 = vsub.f32 %v3076_v34, %v750_v61  ;;  %v928_v42 = vsel %vm4302_vm8, 0.0, %v2340_v28  ;;  %v2342_v51 = vpop.eup %2341 }
 0x1b2   : > { %v820_v21 = vmul.f32 1.442695, %v782_v8  ;;  %v822_v29 = vmul.f32 1.442695, %v783_v35  ;;  %v929_v33 = vsel %vm2815_vm0, 0.0, %v2342_v51  ;;  %vm4304_vm0 = vcmp.eq.s32.totalorder %v2717_v55, %v2722_v57 }
 0x1b3   : > { %v836_v52 = vmul.f32 1.442695, %v790_v53  ;;  %v838_v54 = vmul.f32 1.442695, %v791_v13  ;;  %v957_v34 = vadd.f32 %v929_v33, %v928_v42 }
 0x1b4   : > { %2343 = vpow2.f32 %v820_v21 }
 0x1b5   : > { %2345 = vpow2.f32 %v822_v29  ;;  %958 = vadd.xlane.f32.xlu2 %v957_v34 }
 0x1b6   : > { %2347 = vpow2.f32 %v836_v52 }
 0x1b7   : > { %v725_v1 = vpop.permute.xlu1 %724  ;;  %2349 = vpow2.f32 %v838_v54  ;;  %v3407_v40 = vpop.permute.xlu0 %1441 }
 0x1b8   : > { %v780_v63 = vsub.f32 %v3017_v37, %v725_v1  ;;  %v781_v50 = vsub.f32 %v3021_v44, %v725_v1  ;;  %973 = vadd.xlane.f32.xlu0 %v972_v2  ;;  %v3421_v53 = vpop.permute.xlu2 %1466 }
 0x1ba   : > { %v816_v39 = vmul.f32 1.442695, %v780_v63  ;;  %v2344_v32 = vpop.eup %2343  ;;  %v818_v4 = vmul.f32 1.442695, %v781_v50 }
 0x1bb   : > { %v2346_v7 = vpop.eup %2345  ;;  %v936_v17 = vsel %vm4304_vm0, 0.0, %v2344_v32 }
 0x1bc   : > { %2351 = vpow2.f32 %v816_v39  ;;  %v937_v37 = vsel %vm2771_vm10, 0.0, %v2346_v7  ;;  %v2348_v62 = vpop.eup %2347  ;;  %vm4306_vm10 = vcmp.eq.s32.totalorder %v2706_v49, %v2722_v57 }
 0x1bd   : > { %v969_v44 = vadd.f32 %v937_v37, %v936_v17  ;;  %v2350_v56 = vpop.eup %2349  ;;  %2353 = vpow2.f32 %v818_v4  ;;  %v944_v35 = vsel %vm4305_vm6, 0.0, %v2348_v62 }
 0x1be   : > { %v945_v28 = vsel %vm2929_vm2, 0.0, %v2350_v56  ;;  %vm4308_vm2 = vcmp.eq.s32.totalorder %v2846_v26, %v2722_v57 }
 0x1bf   : > { %v3414_v8 = vpop.permute.xlu1 %1446  ;;  %970 = vadd.xlane.f32.xlu1 %v969_v44  ;;  %v981_v61 = vadd.f32 %v945_v28, %v944_v35  ;;  %v745_v29 = vpop.permute.xlu0 %744 }
 0x1c0   : > { %v788_v5 = vsub.f32 %v3056_v19, %v745_v29  ;;  %v789_v13 = vsub.f32 %v3060_v20, %v745_v29 }
 0x1c1   : > { %982 = vadd.xlane.f32.xlu0 %v981_v61 }
 0x1c2   : > { %v2352_v21 = vpop.eup %2351  ;;  %v832_v51 = vmul.f32 1.442695, %v788_v5  ;;  %v834_v52 = vmul.f32 1.442695, %v789_v13 }
 0x1c3   : > { %v934_v42 = vsel %vm4306_vm10, 0.0, %v2352_v21  ;;  %v2354_v0 = vpop.eup %2353 }
 0x1c4   : > { %v935_v48 = vsel %vm2842_vm9, 0.0, %v2354_v0  ;;  %2355 = vpow2.f32 %v832_v51  ;;  %vm4307_vm9 = vcmp.eq.s32.totalorder %v2775_v6, %v2722_v57  ;;  %v4310_v51 = vld [vmem:[#allocation13_spill] sm:$0xff] }
 0x1c5   : > { %v966_v54 = vadd.f32 %v935_v48, %v934_v42  ;;  %2357 = vpow2.f32 %v834_v52 }
 0x1c7   : > { %v740_v58 = vpop.permute.xlu1 %739  ;;  %967 = vadd.xlane.f32.xlu2 %v966_v54  ;;  %v765_v1 = vpop.permute.xlu2 %764 }
 0x1c8   : > { %v786_v33 = vsub.f32 %v3048_v14, %v740_v58  ;;  %v787_v19 = vsub.f32 %v3052_v15, %v740_v58  ;;  %v796_v63 = vsub.f32 %v3142_v18, %v765_v1  ;;  %v797_v50 = vsub.f32 %v3148_v30, %v765_v1  ;;  %v3441_v18 = vpop.permute.xlu0 %1456  ;;  %v4311_v58 = vld [vmem:[#allocation9_spill] sm:$0xff] }
 0x1ca   : > { %v828_v20 = vmul.f32 1.442695, %v786_v33  ;;  %v830_v34 = vmul.f32 1.442695, %v787_v19  ;;  %v2356_v2 = vpop.eup %2355  ;;  %v848_v39 = vmul.f32 1.442695, %v796_v63 }
 0x1cb   : > { %v2358_v25 = vpop.eup %2357  ;;  %v850_v32 = vmul.f32 1.442695, %v797_v50  ;;  %v942_v14 = vsel %vm4307_vm9, 0.0, %v2356_v2  ;;  %v4314_v63 = vld [vmem:[#allocation7_spill] sm:$0xff]  ;;  %v4316_v2 = vld [vmem:[#allocation8_spill] sm:$0xff] }
 0x1cc   : > { %2359 = vpow2.f32 %v828_v20  ;;  %v943_v15 = vsel %vm2832_vm12, 0.0, %v2358_v25  ;;  %vm4309_vm12 = vcmp.eq.s32.totalorder %v2952_v3, %v2722_v57  ;;  %vm4317_vm1 = vnez %v4316_v2  ;;  %v856_v19 = vld [vmem:[#allocation3] sm:$0xff] }
 0x1cd   : > { %2361 = vpow2.f32 %v830_v34  ;;  %v978_v7 = vadd.f32 %v943_v15, %v942_v14  ;;  %v4318_v14 = vld [vmem:[#allocation14_spill] sm:$0xff] }
 0x1ce   : > { %2363 = vpow2.f32 %v848_v39 }
 0x1cf   : > { %v3437_v4 = vpop.permute.xlu1 %1461  ;;  %2365 = vpow2.f32 %v850_v32  ;;  %979 = vadd.xlane.f32.xlu1 %v978_v7  ;;  %v4319_v7 = vld [vmem:[#allocation15_spill] sm:$0xff] }
 0x1d2   : > { %v2360_v17 = vpop.eup %2359 }
 0x1d3   : > { %v2362_v30 = vpop.eup %2361  ;;  %v940_v37 = vsel %vm4308_vm2, 0.0, %v2360_v17 }
 0x1d4   : > { %v941_v62 = vsel %vm2901_vm5, 0.0, %v2362_v30  ;;  %v2364_v56 = vpop.eup %2363  ;;  %vm4312_vm5 = vcmp.eq.s32.totalorder %v4311_v58, %v2722_v57 }
 0x1d5   : > { %v975_v44 = vadd.f32 %v941_v62, %v940_v37  ;;  %v2366_v35 = vpop.eup %2365  ;;  %v950_v21 = vsel %vm4309_vm12, 0.0, %v2364_v56  ;;  %v4320_v56 = vld [vmem:[#allocation11_spill] sm:$0xff] }
 0x1d6   : > { %v951_v29 = vsel %vm2973_vm13, 0.0, %v2366_v35  ;;  %vm4315_vm13 = vcmp.eq.s32.totalorder %v4314_v63, %v2722_v57 }
 0x1d7   : > { %976 = vadd.xlane.f32.xlu2 %v975_v44  ;;  %v755_v23 = vpop.permute.xlu1 %754  ;;  %v990_v41 = vadd.f32 %v951_v29, %v950_v21  ;;  %v760_v42 = vpop.permute.xlu0 %759  ;;  %v4322_v21 = vsub.f32 %v3227_v24, %v3233_v31 }
 0x1d8   : > { %v792_v28 = vsub.f32 %v3094_v46, %v755_v23  ;;  %v793_v61 = vsub.f32 %v3100_v47, %v755_v23  ;;  %v794_v0 = vsub.f32 %v3118_v38, %v760_v42  ;;  %v795_v52 = vsub.f32 %v4310_v51, %v760_v42  ;;  %v858_v51 = vld [vmem:[#allocation3 + $0x10] sm:$0xff] }
 0x1d9   : > { %991 = vadd.xlane.f32.xlu0 %v990_v41  ;;  %v888_v29 = vmul.f32 1.442695, %v4322_v21 }
 0x1da   : > { %v840_v5 = vmul.f32 1.442695, %v792_v28  ;;  %v842_v13 = vmul.f32 1.442695, %v793_v61  ;;  %v844_v46 = vmul.f32 1.442695, %v794_v0 }
 0x1db   : > { %v846_v47 = vmul.f32 1.442695, %v795_v52 }
 0x1dc   : > { %2367 = vpow2.f32 %v840_v5 }
 0x1dd   : > { %2369 = vpow2.f32 %v842_v13  ;;  %v4323_v13 = vld [vmem:[#allocation16_spill] sm:$0xff] }
 0x1de   : > { %2371 = vpow2.f32 %v844_v46  ;;  %v4324_v41 = vsub.f32 %v3213_v9, %v4323_v13  ;;  %v4337_v13 = vld [vmem:[#allocation31_spill] sm:$0xff] }
 0x1df   : > { %2373 = vpow2.f32 %v846_v47  ;;  %v3479_v5 = vpop.permute.xlu0 %1471 }
 0x1e0   : > { %v3457_v54 = vpop.permute.xlu1 %1476  ;;  %v884_v42 = vmul.f32 1.442695, %v4324_v41  ;;  %v4338_v41 = vld [vmem:[#allocation32_spill] sm:$0xff] }
 0x1e2   : > { %v2368_v48 = vpop.eup %2367 }
 0x1e3   : > { %v2370_v12 = vpop.eup %2369  ;;  %v946_v33 = vsel %vm4312_vm5, 0.0, %v2368_v48  ;;  %v4325_v48 = vld [vmem:[#allocation17_spill] sm:$0xff] }
 0x1e4   : > { %v947_v38 = vsel %vm2948_vm14, 0.0, %v2370_v12  ;;  %v2372_v20 = vpop.eup %2371  ;;  %v4326_v12 = vld [vmem:[#allocation18_spill] sm:$0xff] }
 0x1e5   : > { %v984_v34 = vadd.f32 %v947_v38, %v946_v33  ;;  %v2374_v1 = vpop.eup %2373  ;;  %v948_v50 = vsel %vm4315_vm13, 0.0, %v2372_v20  ;;  %v4327_v33 = vsub.f32 %v4325_v48, %v4326_v12  ;;  %v4328_v20 = vld [vmem:[#allocation20_spill] sm:$0xff] }
 0x1e6   : > { %v949_v25 = vsel %vm4317_vm1, 0.0, %v2374_v1 }
 0x1e7   : > { %985 = vadd.xlane.f32.xlu2 %v984_v34  ;;  %v987_v39 = vadd.f32 %v949_v25, %v948_v50  ;;  %v890_v24 = vmul.f32 1.442695, %v4327_v33  ;;  %v4329_v34 = vld [vmem:[#allocation22_spill] sm:$0xff]  ;;  %v4331_v25 = vld [vmem:[#allocation25_spill] sm:$0xff] }
 0x1e8   : > { %v770_v32 = vpop.permute.xlu1 %769  ;;  %v4330_v1 = vsub.f32 %v4328_v20, %v4329_v34 }
 0x1e9   : > { %988 = vadd.xlane.f32.xlu1 %v987_v39  ;;  %v798_v15 = vsub.f32 %v4318_v14, %v770_v32  ;;  %v799_v17 = vsub.f32 %v4319_v7, %v770_v32  ;;  %v4332_v39 = vld [vmem:[#allocation26_spill] sm:$0xff] }
 0x1ea   : > { %v886_v50 = vmul.f32 1.442695, %v4330_v1  ;;  %v4333_v32 = vsub.f32 %v4331_v25, %v4332_v39  ;;  %v865_v39 = vld [vmem:[#allocation3 + $0x48] sm:$0xff] }
 0x1eb   : > { %v852_v30 = vmul.f32 1.442695, %v798_v15  ;;  %v854_v37 = vmul.f32 1.442695, %v799_v17  ;;  %v859_v17 = vld [vmem:[#allocation3 + $0x18] sm:$0xff] }
 0x1ec   : > { %v896_v14 = vmul.f32 1.442695, %v4333_v32 }
 0x1ed   : > { %2375 = vpow2.f32 %v852_v30  ;;  %v3497_v30 = vpop.permute.xlu2 %1481 }
 0x1ee   : > { %2377 = vpow2.f32 %v854_v37 }
 0x1ef   : > { %2379 = vpow2.f32 %v888_v29 }
 0x1f0   : > { %2381 = vpow2.f32 %v884_v42  ;;  %v3484_v52 = vpop.permute.xlu0 %1486  ;;  %v4339_v42 = vsub.f32 %v4337_v13, %v4338_v41  ;;  %v4346_v13 = vld [vmem:[#allocation27_spill] sm:$0xff]  ;;  %v4347_v41 = vld [vmem:[#allocation28_spill] sm:$0xff] }
 0x1f1   : > { %2383 = vpow2.f32 %v890_v24 }
 0x1f2   : > { %2385 = vpow2.f32 %v886_v50  ;;  %v861_v50 = vld [vmem:[#allocation3 + $0x28] sm:$0xff] }
 0x1f3   : > { %v2376_v62 = vpop.eup %2375  ;;  %2387 = vpow2.f32 %v896_v14 }
 0x1f4   : > { %v2378_v44 = vpop.eup %2377  ;;  %v952_v23 = vsel %vm570_vm4, 0.0, %v2376_v62  ;;  %v4334_v62 = vld [vmem:[#allocation23_spill] sm:$0xff] }
 0x1f5   : > { %v953_v28 = vsel %vm2994_vm3, 0.0, %v2378_v44  ;;  %v2380_v0 = vpop.eup %2379  ;;  %v4335_v44 = vld [vmem:[#allocation24_spill] sm:$0xff] }
 0x1f6   : > { %v993_v61 = vadd.f32 %v953_v28, %v952_v23  ;;  %v914_v57 = vmul.f32 %v2380_v0, %v858_v51  ;;  %v2382_v31 = vpop.eup %2381  ;;  %v4336_v23 = vsub.f32 %v4334_v62, %v4335_v44  ;;  %v902_v0 = vmul.f32 1.442695, %v4339_v42  ;;  %v857_v51 = vld [vmem:[#allocation3 + $0x8] sm:$0xff]  ;;  %v4344_v62 = vld [vmem:[#allocation30_spill] sm:$0xff] }
 0x1f7   : > { %v912_v38 = vmul.f32 %v2382_v31, %v856_v19  ;;  %v2384_v7 = vpop.eup %2383  ;;  %v4340_v31 = vld [vmem:[#allocation19_spill] sm:$0xff]  ;;  %v4341_v19 = vld [vmem:[#allocation21_spill] sm:$0xff]  ;;  %v4348_v42 = vsub.f32 %v4346_v13, %v4347_v41 }
 0x1f8   : > { %994 = vadd.xlane.f32.xlu2 %v993_v61  ;;  %v915_v37 = vmul.f32 %v2384_v7, %v859_v17  ;;  %v894_v35 = vmul.f32 1.442695, %v4336_v23  ;;  %v2386_v29 = vpop.eup %2385 }
 0x1fa   : > { %2389 = vpow2.f32 %v894_v35 }
 0x1fb   : > { %2391 = vpow2.f32 %v902_v0  ;;  %v898_v0 = vmul.f32 1.442695, %v4348_v42 }
 0x213   : > { %v962_v46 = vpop.xlane.xlu1 %961 }
 0x214   : > { %v998_v47 = vadd.f32 %v962_v46, %v914_v57  ;;  %v2388_v57 = vpop.eup %2387  ;;  %v862_v46 = vld [vmem:[#allocation3 + $0x30] sm:$0xff] }
 0x215   : > { %v918_v12 = vmul.f32 %v2388_v57, %v862_v46  ;;  %v2390_v34 = vpop.eup %2389 }
 0x216   : > { %1012 = vst.msk [vmem:[#allocation3 + $0x10] sm:$0xff] %vm265_vm11, %v998_v47  ;;  %v913_v47 = vmul.f32 %v2386_v29, %v857_v51  ;;  %v917_v25 = vmul.f32 %v2390_v34, %v861_v50  ;;  %v3519_v51 = vpop.f32.mrf.mxu3 }
 0x21b   : > { %v956_v9 = vpop.xlane.xlu0 %955 }
 0x21c   : > { %v996_v2 = vadd.f32 %v956_v9, %v912_v38  ;;  %v4342_v38 = vsub.f32 %v4340_v31, %v4341_v19  ;;  %v4350_v31 = vld [vmem:[#allocation38_spill] sm:$0xff] }
 0x21d   : > { %v1194_v15 = vld [vmem:[#allocation3 + $0x10] sm:$0xff] }
 0x21e   : > { %1010 = vst.msk [vmem:[#allocation3] sm:$0xff] %vm265_vm11, %v996_v2  ;;  %1585 = vperm.xlu0 %2320, %v1194_v15   ;;  %v892_v9 = vmul.f32 1.442695, %v4342_v38  ;;  %v2392_v2 = vpop.eup %2391  ;;  %v3527_v50 = vpop.f32.mrf.mxu3 }
 0x21f   : > { %v921_v15 = vmul.f32 %v2392_v2, %v865_v39  ;;  %v863_v39 = vld [vmem:[#allocation3 + $0x38] sm:$0xff] }
 0x220   : > { %2393 = vpow2.f32 %v892_v9  ;;  %v864_v9 = vld [vmem:[#allocation3 + $0x40] sm:$0xff] }
 0x223   : > { %v965_v28 = vpop.xlane.xlu0 %964 }
 0x224   : > { %v999_v61 = vadd.f32 %v965_v28, %v915_v37  ;;  %v4343_v37 = vld [vmem:[#allocation29_spill] sm:$0xff] }
 0x225   : > { %v1192_v21 = vld [vmem:[#allocation3] sm:$0xff]  ;;  %v4345_v44 = vsub.f32 %v4343_v37, %v4344_v62  ;;  %v4352_v62 = vld [vmem:[#allocation33_spill] sm:$0xff] }
 0x226   : > { %1013 = vst.msk [vmem:[#allocation3 + $0x18] sm:$0xff] %vm265_vm11, %v999_v61  ;;  %1575 = vperm.xlu1 %2321, %v1192_v21   ;;  %v2394_v61 = vpop.eup %2393  ;;  %v860_v21 = vld [vmem:[#allocation3 + $0x20] sm:$0xff] }
 0x227   : > { %v900_v23 = vmul.f32 1.442695, %v4345_v44  ;;  %v916_v29 = vmul.f32 %v2394_v61, %v860_v21  ;;  %v868_v37 = vld [vmem:[#allocation3 + $0x60] sm:$0xff]  ;;  %v4353_v44 = vld [vmem:[#allocation34_spill] sm:$0xff]  ;;  %v4355_v61 = vld [vmem:[#allocation35_spill] sm:$0xff] }
 0x228   : > { %v959_v48 = vpop.xlane.xlu2 %958  ;;  %v4356_v21 = vld [vmem:[#allocation36_spill] sm:$0xff] }
 0x229   : > { %v997_v33 = vadd.f32 %v959_v48, %v913_v47  ;;  %2395 = vpow2.f32 %v900_v23  ;;  %v3521_v48 = vpop.f32.mrf.mxu2  ;;  %v4354_v23 = vsub.f32 %v4352_v62, %v4353_v44 }
 0x22a   : > { %2397 = vpow2.f32 %v898_v0  ;;  %v1297_v0 = vpop.f32.mrf.mxu3 }
 0x22b   : > { %v974_v24 = vpop.xlane.xlu0 %973  ;;  %1011 = vst.msk [vmem:[#allocation3 + $0x8] sm:$0xff] %vm265_vm11, %v997_v33 }
 0x22c   : > { %v1002_v20 = vadd.f32 %v974_v24, %v918_v12  ;;  %v4349_v24 = vld [vmem:[#allocation37_spill] sm:$0xff] }
 0x22d   : > { %v1195_v1 = vld [vmem:[#allocation3 + $0x18] sm:$0xff]  ;;  %v4351_v19 = vsub.f32 %v4349_v24, %v4350_v31 }
 0x22e   : > { %1016 = vst.msk [vmem:[#allocation3 + $0x30] sm:$0xff] %vm265_vm11, %v1002_v20  ;;  %1590 = vperm.xlu1 %2321, %v1195_v1  }
 0x22f   : > { %v2396_v33 = vpop.eup %2395  ;;  %v908_v38 = vmul.f32 1.442695, %v4351_v19 }
 0x230   : > { %v920_v20 = vmul.f32 %v2396_v33, %v864_v9  ;;  %v2398_v1 = vpop.eup %2397  ;;  %v866_v33 = vld [vmem:[#allocation3 + $0x50] sm:$0xff] }
 0x231   : > { %2399 = vpow2.f32 %v908_v38  ;;  %v867_v38 = vld [vmem:[#allocation3 + $0x58] sm:$0xff] }
 0x232   : > { %v971_v32 = vpop.xlane.xlu1 %970  ;;  %v1193_v7 = vld [vmem:[#allocation3 + $0x8] sm:$0xff]  ;;  %v1300_v9 = vpop.f32.mrf.mxu3 }
 0x233   : > { %v1001_v14 = vadd.f32 %v971_v32, %v917_v25  ;;  %1580 = vperm.xlu2 %2322, %v1193_v7   ;;  %v1235_v32 = vpop.f32.mrf.mxu2 }
 0x234   : > { %v983_v17 = vpop.xlane.xlu0 %982 }
 0x235   : > { %1015 = vst.msk [vmem:[#allocation3 + $0x28] sm:$0xff] %vm265_vm11, %v1001_v14  ;;  %v1005_v35 = vadd.f32 %v983_v17, %v921_v15  ;;  %v1198_v28 = vld [vmem:[#allocation3 + $0x30] sm:$0xff]  ;;  %v919_v14 = vmul.f32 %v2398_v1, %v863_v39 }
 0x236   : > { %1605 = vperm.xlu1 %2321, %v1198_v28  }
 0x237   : > { %1019 = vst.msk [vmem:[#allocation3 + $0x48] sm:$0xff] %vm265_vm11, %v1005_v35  ;;  %v2400_v7 = vpop.eup %2399  ;;  %v904_v35 = vmul.f32 1.442695, %v4354_v23 }
 0x238   : > { %v924_v28 = vmul.f32 %v2400_v7, %v868_v37 }
 0x239   : > { %2401 = vpow2.f32 %v904_v35 }
 0x23a   : > { %v968_v57 = vpop.xlane.xlu2 %967  ;;  %v1303_v37 = vpop.f32.mrf.mxu3 }
 0x23b   : > { %v1000_v46 = vadd.f32 %v968_v57, %v916_v29  ;;  %v4357_v29 = vsub.f32 %v4355_v61, %v4356_v21 }
 0x23c   : > { %v1197_v47 = vld [vmem:[#allocation3 + $0x28] sm:$0xff] }
 0x23d   : > { %1600 = vperm.xlu0 %2320, %v1197_v47   ;;  %1014 = vst.msk [vmem:[#allocation3 + $0x20] sm:$0xff] %vm265_vm11, %v1000_v46  ;;  %v906_v13 = vmul.f32 1.442695, %v4357_v29  ;;  %v1238_v46 = vpop.f32.mrf.mxu2 }
 0x23e   : > { %v1201_v12 = vld [vmem:[#allocation3 + $0x48] sm:$0xff] }
 0x23f   : > { %1620 = vperm.xlu1 %2321, %v1201_v12   ;;  %2403 = vpow2.f32 %v906_v13  ;;  %v2402_v12 = vpop.eup %2401 }
 0x240   : > { %v922_v19 = vmul.f32 %v2402_v12, %v866_v33  ;;  %v4361_v12 = vld [vmem:[#allocation6_spill] sm:$0xff] }
 0x241   : > { %vm4362_vm3 = vcmp.lt.s32.totalorder %v4361_v12, 200 }
 0x242   : > { %v980_v34 = vpop.xlane.xlu1 %979  ;;  %v3543_v29 = vpop.f32.mrf.mxu3  ;;  %v1394_v33 = vsel %vm4362_vm3, %v3527_v50, -1e+30  ;;  %vm4363_vm14 = vmmov %vm4362_vm3 }
 0x243   : > { %v1004_v2 = vadd.f32 %v980_v34, %v920_v20  ;;  %vm4364_vm4 = vmmov %vm4362_vm3 }
 0x244   : > { %v1196_v25 = vld [vmem:[#allocation3 + $0x20] sm:$0xff]  ;;  %vm4366_vm7 = vmmov %vm4362_vm3 }
 0x245   : > { %1595 = vperm.xlu2 %2322, %v1196_v25   ;;  %1018 = vst.msk [vmem:[#allocation3 + $0x40] sm:$0xff] %vm265_vm11, %v1004_v2  ;;  %v2404_v24 = vpop.eup %2403  ;;  %v1241_v1 = vpop.f32.mrf.mxu2  ;;  %vm4367_vm8 = vmmov %vm4362_vm3 }
 0x246   : > { %v923_v2 = vmul.f32 %v2404_v24, %v867_v38  ;;  %v1396_v24 = vsel %vm4363_vm14, %v1297_v0, -1e+30  ;;  %v3559_v38 = vsub.f32 %v1235_v32, %v3389_v45  ;;  %vm4368_vm15 = vmmov %vm4362_vm3 }
 0x247   : > { %vm4369_vm2 = vmmov %vm4362_vm3 }
 0x248   : > { %v1521_v0 = vmul.f32 1.442695, %v3559_v38  ;;  %vm4370_vm12 = vmmov %vm4369_vm2 }
 0x249   : > { %vm4371_vm5 = vmmov %vm4369_vm2 }
 0x24a   : > { %v977_v15 = vpop.xlane.xlu2 %976  ;;  %vm4372_vm13 = vmmov %vm4369_vm2 }
 0x24b   : > { %v1003_v17 = vadd.f32 %v977_v15, %v919_v14  ;;  %v4358_v14 = vld [vmem:[#allocation39_spill] sm:$0xff]  ;;  %v4359_v15 = vld [vmem:[#allocation40_spill] sm:$0xff]  ;;  %vm4373_vm3 = vmmov %vm4369_vm2 }
 0x24c   : > { %v992_v41 = vpop.xlane.xlu0 %991  ;;  %v1200_v42 = vld [vmem:[#allocation3 + $0x40] sm:$0xff]  ;;  %v4360_v7 = vsub.f32 %v4358_v14, %v4359_v15 }
 0x24d   : > { %1017 = vst.msk [vmem:[#allocation3 + $0x38] sm:$0xff] %vm265_vm11, %v1003_v17  ;;  %v1008_v57 = vadd.f32 %v992_v41, %v924_v28  ;;  %1615 = vperm.xlu0 %2320, %v1200_v42   ;;  %v1244_v44 = vpop.f32.mrf.mxu2  ;;  %v869_v28 = vld [vmem:[#allocation3 + $0x68] sm:$0xff] }
 0x24e   : > { %v910_v17 = vmul.f32 1.442695, %v4360_v7 }
 0x24f   : > { %1022 = vst.msk [vmem:[#allocation3 + $0x60] sm:$0xff] %vm265_vm11, %v1008_v57  ;;  %v1309_v57 = vpop.f32.mrf.mxu3 }
 0x250   : > { %2405 = vpow2.f32 %v910_v17 }
 0x254   : > { %v1199_v47 = vld [vmem:[#allocation3 + $0x38] sm:$0xff] }
 0x255   : > { %1610 = vperm.xlu2 %2322, %v1199_v47   ;;  %v3545_v41 = vpop.f32.mrf.mxu2 }
 0x256   : > { %v1204_v31 = vld [vmem:[#allocation3 + $0x60] sm:$0xff]  ;;  %v2406_v35 = vpop.eup %2405 }
 0x257   : > { %1635 = vperm.xlu1 %2321, %v1204_v31   ;;  %v925_v61 = vmul.f32 %v2406_v35, %v869_v28  ;;  %v3554_v31 = vsub.f32 %v1238_v46, %v3378_v36  ;;  %v1398_v28 = vsel %vm4367_vm8, %v1300_v9, -1e+30  ;;  %vm4374_vm8 = vmmov %vm4369_vm2 }
 0x258   : > { %v3606_v9 = vsub.f32 %v1398_v28, %v3360_v16 }
 0x259   : > { %v1525_v50 = vmul.f32 1.442695, %v3554_v31 }
 0x25a   : > { %v986_v20 = vpop.xlane.xlu2 %985 }
 0x25b   : > { %v1006_v34 = vadd.f32 %v986_v20, %v922_v19  ;;  %v3556_v19 = vpop.f32.mrf.mxu3  ;;  %v3562_v20 = vsub.f32 %v1394_v33, %v3389_v45  ;;  %2407 = vpow2.f32 %v1525_v50  ;;  %v4365_v45 = vld [vmem:[#allocation41_spill] sm:$0xff] }
 0x25c   : > { %v989_v25 = vpop.xlane.xlu1 %988  ;;  %2409 = vpow2.f32 %v1521_v0 }
 0x25d   : > { %1020 = vst.msk [vmem:[#allocation3 + $0x50] sm:$0xff] %vm265_vm11, %v1006_v34  ;;  %v1007_v39 = vadd.f32 %v989_v25, %v923_v2  ;;  %v1250_v47 = vpop.f32.mrf.mxu2  ;;  %v3565_v34 = vsub.f32 %v1396_v24, %v3378_v36  ;;  %v1523_v46 = vmul.f32 1.442695, %v3562_v20  ;;  %v1392_v25 = vsel %vm4364_vm4, %v3519_v51, -1e+30 }
 0x25e   : > { %v3581_v36 = vsub.f32 %v1392_v25, %v4365_v45  ;;  %v1404_v25 = vsel %vm4368_vm15, %v1309_v57, -1e+30 }
 0x25f   : > { %1021 = vst.msk [vmem:[#allocation3 + $0x58] sm:$0xff] %vm265_vm11, %v1007_v39  ;;  %v1527_v32 = vmul.f32 1.442695, %v3565_v34  ;;  %v3578_v39 = vsub.f32 %v3521_v48, %v4365_v45  ;;  %2411 = vpow2.f32 %v1523_v46  ;;  %v3617_v45 = vsub.f32 %v1250_v47, %v3382_v22 }
 0x260   : > { %v1519_v17 = vmul.f32 1.442695, %v3581_v36 }
 0x261   : > { %2413 = vpow2.f32 %v1527_v32  ;;  %v1517_v15 = vmul.f32 1.442695, %v3578_v39  ;;  %v2408_v51 = vpop.eup %2407 }
 0x262   : > { %v2410_v48 = vpop.eup %2409 }
 0x263   : > { %v3583_v14 = vpop.f32.mrf.mxu3  ;;  %2415 = vpow2.f32 %v1517_v15 }
 0x264   : > { %v1202_v62 = vld [vmem:[#allocation3 + $0x50] sm:$0xff]  ;;  %2417 = vpow2.f32 %v1519_v17  ;;  %v1531_v17 = vmul.f32 1.442695, %v3606_v9 }
 0x265   : > { %1625 = vperm.xlu2 %2322, %v1202_v62   ;;  %v3567_v2 = vpop.f32.mrf.mxu2  ;;  %v1400_v62 = vsel %vm4366_vm7, %v1303_v37, -1e+30  ;;  %v2412_v35 = vpop.eup %2411 }
 0x266   : > { %v1203_v23 = vld [vmem:[#allocation3 + $0x58] sm:$0xff]  ;;  %v3603_v37 = vsub.f32 %v1400_v62, %v3407_v40  ;;  %v3622_v62 = vsub.f32 %v1404_v25, %v3382_v22  ;;  %v1406_v25 = vsel %vm4370_vm12, %v3556_v19, -1e+30  ;;  %vm4376_vm12 = vmmov %vm4373_vm3 }
 0x267   : > { %1630 = vperm.xlu0 %2320, %v1203_v23   ;;  %v3592_v23 = vsub.f32 %v1241_v1, %v3360_v16 }
 0x268   : > { %v1535_v15 = vmul.f32 1.442695, %v3603_v37 }
 0x26b   : > { %v995_v21 = vpop.xlane.xlu2 %994  ;;  %v1318_v16 = vpop.f32.mrf.mxu3 }
 0x26c   : > { %v1009_v13 = vadd.f32 %v995_v21, %v925_v61  ;;  %v3597_v61 = vsub.f32 %v1244_v44, %v3407_v40  ;;  %v1529_v44 = vmul.f32 1.442695, %v3592_v23 }
 0x26d   : > { %v3586_v7 = vpop.f32.mrf.mxu2 }
 0x26e   : > { %1023 = vst.msk [vmem:[#allocation3 + $0x68] sm:$0xff] %vm265_vm11, %v1009_v13  ;;  %v1214_v13 = vld [vmem:[%s4178_s3] sm:$0x3]  ;;  %v1533_v40 = vmul.f32 1.442695, %v3597_v61 }
 0x26f   : > { %v3609_v46 = vperm.slane %v1214_v13, 0  ;;  %v3614_v32 = vperm.slane %v1214_v13, 1 }
 0x271   : > { %vm1339_vm0 = vcmp.eq.s32.totalorder %v2727_v59, %v3609_v46  ;;  %vm1340_vm6 = vcmp.eq.s32.totalorder %v2727_v59, %v3614_v32  ;;  %vm1337_vm10 = vcmp.eq.s32.totalorder %v2786_v11, %v3609_v46  ;;  %vm1338_vm9 = vcmp.eq.s32.totalorder %v2786_v11, %v3614_v32 }
 0x272   : > { %vm1366_vm1 = vmand %vm1338_vm9, %vm4372_vm13  ;;  %vm1336_vm4 = vcmp.eq.s32.totalorder %v2729_v60, %v3614_v32  ;;  %vm1335_vm7 = vcmp.eq.s32.totalorder %v2729_v60, %v3609_v46  ;;  %vm1341_vm9 = vcmp.eq.s32.totalorder %v2784_v10, %v3609_v46 }
 0x273   : > { %vm1368_vm14 = vmand %vm1340_vm6, %vm4373_vm3  ;;  %vm1344_vm6 = vcmp.eq.s32.totalorder %v2706_v49, %v3614_v32 }
 0x274   : > { %vm1364_vm15 = vmand %vm1336_vm4, %vm4374_vm8  ;;  %vm1345_vm4 = vcmp.eq.s32.totalorder %v2717_v55, %v3609_v46  ;;  %vm1347_vm8 = vcmp.eq.s32.totalorder %v2848_v27, %v3609_v46 }
 0x275   : > { %v1205_v42 = vld [vmem:[#allocation3 + $0x68] sm:$0xff]  ;;  %v1259_v57 = vpop.f32.mrf.mxu2 }
 0x276   : > { %1640 = vperm.xlu2 %2322, %v1205_v42   ;;  %v2414_v42 = vpop.eup %2413 }
 0x28d   : > { %v1581_v21 = vpop.permute.xlu2 %1580 }
 0x28e   : > { %v1645_v33 = vadd.f32 %v2410_v48, %v1581_v21  ;;  %v1646_v1 = vadd.f32 %v2412_v35, %v1581_v21  ;;  %v1541_v35 = vmul.f32 1.442695, %v3617_v45  ;;  %v3635_v21 = vsub.f32 %v3545_v41, %v3414_v8 }
 0x290   : > { %v1586_v24 = vpop.permute.xlu0 %1585  ;;  %2419 = vlog2.f32 %v1645_v33 }
 0x291   : > { %v1647_v50 = vadd.f32 %v2408_v51, %v1586_v24  ;;  %v1648_v0 = vadd.f32 %v2414_v42, %v1586_v24  ;;  %2421 = vlog2.f32 %v1646_v1  ;;  %v2416_v51 = vpop.eup %2415  ;;  %v1402_v24 = vsel %vm4369_vm2, %v3543_v29, -1e+30 }
 0x292   : > { %v2418_v48 = vpop.eup %2417 }
 0x293   : > { %2423 = vlog2.f32 %v1647_v50  ;;  %v1543_v50 = vmul.f32 1.442695, %v3622_v62 }
 0x294   : > { %2425 = vlog2.f32 %v1648_v0 }
 0x295   : > { %2427 = vpow2.f32 %v1529_v44 }
 0x296   : > { %2429 = vpow2.f32 %v1533_v40  ;;  %v2420_v47 = vpop.eup %2419 }
 0x297   : > { %2431 = vpow2.f32 %v1535_v15  ;;  %v2422_v22 = vpop.eup %2421  ;;  %v1676_v13 = vmul.f32 0.6931472, %v2420_v47  ;;  %v1537_v47 = vmul.f32 1.442695, %v3635_v21 }
 0x298   : > { %v1576_v28 = vpop.permute.xlu1 %1575  ;;  %2433 = vpow2.f32 %v1531_v17  ;;  %v1678_v0 = vmul.f32 0.6931472, %v2422_v22 }
 0x299   : > { %v1643_v42 = vadd.f32 %v2416_v51, %v1576_v28  ;;  %v1644_v33 = vadd.f32 %v2418_v48, %v1576_v28  ;;  %v2424_v1 = vpop.eup %2423  ;;  %v1729_v41 = vsub.f32 %v3559_v38, %v1676_v13  ;;  %v1410_v51 = vsel %vm4371_vm5, %v1318_v16, -1e+30  ;;  %v3658_v28 = vpop.f32.mrf.mxu3  ;;  %vm4377_vm5 = vmmov %vm4373_vm3 }
 0x29a   : > { %v2426_v44 = vpop.eup %2425  ;;  %v1680_v40 = vmul.f32 0.6931472, %v2424_v1  ;;  %v1730_v29 = vsub.f32 %v3562_v20, %v1678_v0  ;;  %v3662_v20 = vsub.f32 %v3567_v2, %v3441_v18  ;;  %v3666_v13 = vsub.f32 %v1259_v57, %v3421_v53  ;;  %v3682_v57 = vpop.f32.mrf.mxu2  ;;  %vm1372_vm13 = vmand %vm1344_vm6, %vm4377_vm5 }
 0x29b   : > { %2435 = vlog2.f32 %v1643_v42  ;;  %v2428_v15 = vpop.eup %2427  ;;  %v1682_v17 = vmul.f32 0.6931472, %v2426_v44  ;;  %v1771_v19 = vsel %vm1337_vm10, %v1729_v41, 0.0  ;;  %v3669_v42 = vsub.f32 %v1406_v25, %v3441_v18  ;;  %vm4375_vm10 = vmmov %vm4369_vm2 }
 0x29c   : > { %2437 = vlog2.f32 %v1644_v33  ;;  %v2430_v48 = vpop.eup %2429  ;;  %v1731_v38 = vsub.f32 %v3554_v31, %v1680_v40  ;;  %v3685_v59 = vsub.f32 %v1410_v51, %v3421_v53  ;;  %v1553_v51 = vmul.f32 1.442695, %v3666_v13 }
 0x29d   : > { %2439 = vpow2.f32 %v1541_v35  ;;  %v2432_v16 = vpop.eup %2431  ;;  %v1772_v35 = vsel %vm1366_vm1, %v1730_v29, 0.0  ;;  %v1732_v22 = vsub.f32 %v3565_v34, %v1682_v17  ;;  %v3680_v34 = vsub.f32 %v1402_v24, %v3414_v8  ;;  %vm4378_vm1 = vmmov %vm4373_vm3 }
 0x29e   : > { %2441 = vpow2.f32 %v1543_v50  ;;  %v1800_v33 = vadd.f32 %v1772_v35, %v1771_v19  ;;  %v1773_v31 = vsel %vm1339_vm0, %v1731_v38, 0.0  ;;  %v2434_v2 = vpop.eup %2433  ;;  %v1545_v29 = vmul.f32 1.442695, %v3662_v20 }
 0x29f   : > { %v1596_v11 = vpop.permute.xlu2 %1595  ;;  %v1774_v0 = vsel %vm1368_vm14, %v1732_v22, 0.0  ;;  %2443 = vpow2.f32 %v1537_v47  ;;  %v1539_v47 = vmul.f32 1.442695, %v3680_v34  ;;  %vm1343_vm0 = vcmp.eq.s32.totalorder %v2706_v49, %v3609_v46 }
 0x2a0   : > { %v1651_v18 = vadd.f32 %v2430_v48, %v1596_v11  ;;  %v1652_v1 = vadd.f32 %v2432_v16, %v1596_v11  ;;  %v1591_v50 = vpop.permute.xlu1 %1590  ;;  %1801 = vadd.xlane.f32.xlu1 %v1800_v33  ;;  %v1803_v41 = vadd.f32 %v1774_v0, %v1773_v31  ;;  %v1547_v48 = vmul.f32 1.442695, %v3669_v42 }
 0x2a1   : > { %v2436_v44 = vpop.eup %2435  ;;  %v1649_v25 = vadd.f32 %v2428_v15, %v1591_v50  ;;  %v1650_v40 = vadd.f32 %v2434_v2, %v1591_v50  ;;  %v1555_v16 = vmul.f32 1.442695, %v3685_v59  ;;  %v1412_v0 = vsel %vm4375_vm10, %v3658_v28, -1e+30 }
 0x2a2   : > { %v2438_v17 = vpop.eup %2437  ;;  %v1672_v8 = vmul.f32 0.6931472, %v2436_v44  ;;  %2445 = vlog2.f32 %v1651_v18  ;;  %1804 = vadd.xlane.f32.xlu2 %v1803_v41  ;;  %v3709_v44 = vpop.f32.mrf.mxu2  ;;  %vm1342_vm2 = vcmp.eq.s32.totalorder %v2784_v10, %v3614_v32  ;;  %v1408_v28 = vsel %vm4376_vm12, %v3583_v14, -1e+30 }
 0x2a3   : > { %v2440_v24 = vpop.eup %2439  ;;  %v1674_v19 = vmul.f32 0.6931472, %v2438_v17  ;;  %2447 = vlog2.f32 %v1652_v1  ;;  %vm1370_vm3 = vmand %vm1342_vm2, %vm4378_vm1  ;;  %vm1348_vm14 = vcmp.eq.s32.totalorder %v2848_v27, %v3614_v32  ;;  %vm1349_vm10 = vcmp.eq.s32.totalorder %v2846_v26, %v3609_v46 }
 0x2a4   : > { %v2442_v15 = vpop.eup %2441  ;;  %2449 = vlog2.f32 %v1649_v25  ;;  %v1727_v53 = vsub.f32 %v3578_v39, %v1672_v8  ;;  %v3700_v39 = vpop.f32.mrf.mxu3  ;;  %vm1353_vm2 = vcmp.eq.s32.totalorder %v2907_v43, %v3609_v46 }
 0x2a5   : > { %2451 = vlog2.f32 %v1650_v40  ;;  %v1728_v38 = vsub.f32 %v3581_v36, %v1674_v19  ;;  %v2444_v22 = vpop.eup %2443  ;;  %v3722_v19 = vsub.f32 %v3682_v57, %v3479_v5 }
 0x2a6   : > { %2453 = vpow2.f32 %v1545_v29  ;;  %v1769_v35 = vsel %vm1335_vm7, %v1727_v53, 0.0  ;;  %vm1346_vm7 = vcmp.eq.s32.totalorder %v2717_v55, %v3614_v32 }
 0x2a7   : > { %2455 = vpow2.f32 %v1547_v48  ;;  %v1770_v11 = vsel %vm1364_vm15, %v1728_v38, 0.0  ;;  %vm4379_vm15 = vmmov %vm4378_vm1 }
 0x2a8   : > { %v2446_v33 = vpop.eup %2445  ;;  %2457 = vpow2.f32 %v1539_v47  ;;  %v1606_v31 = vpop.permute.xlu1 %1605  ;;  %v1797_v2 = vadd.f32 %v1770_v11, %v1769_v35 }
 0x2a9   : > { %v2448_v60 = vpop.eup %2447  ;;  %2459 = vpow2.f32 %v1553_v51  ;;  %v1688_v36 = vmul.f32 0.6931472, %v2446_v33  ;;  %v1655_v18 = vadd.f32 %v2440_v24, %v1606_v31  ;;  %v1656_v1 = vadd.f32 %v2442_v15, %v1606_v31 }
 0x2aa   : > { %v2450_v50 = vpop.eup %2449  ;;  %2461 = vpow2.f32 %v1555_v16  ;;  %v1690_v25 = vmul.f32 0.6931472, %v2448_v60  ;;  %1798 = vadd.xlane.f32.xlu0 %v1797_v2  ;;  %v3725_v15 = vsub.f32 %v1412_v0, %v3479_v5  ;;  %v3747_v31 = vsub.f32 %v3586_v7, %v3437_v4 }
 0x2ab   : > { %v2452_v40 = vpop.eup %2451  ;;  %v1684_v41 = vmul.f32 0.6931472, %v2450_v50  ;;  %2463 = vlog2.f32 %v1655_v18  ;;  %v1735_v17 = vsub.f32 %v3597_v61, %v1688_v36  ;;  %v3750_v2 = vsub.f32 %v1408_v28, %v3437_v4  ;;  %v1268_v4 = vpop.f32.mrf.mxu2 }
 0x2ac   : > { %v2454_v29 = vpop.eup %2453  ;;  %v1686_v8 = vmul.f32 0.6931472, %v2452_v40  ;;  %2465 = vlog2.f32 %v1656_v1  ;;  %v1736_v24 = vsub.f32 %v3603_v37, %v1690_v25  ;;  %v1557_v60 = vmul.f32 1.442695, %v3722_v19  ;;  %v1327_v10 = vpop.f32.mrf.mxu3 }
 0x2ad   : > { %v2456_v48 = vpop.eup %2455  ;;  %v1777_v14 = vsel %vm1343_vm0, %v1735_v17, 0.0  ;;  %v1733_v37 = vsub.f32 %v3592_v23, %v1684_v41  ;;  %v1559_v7 = vmul.f32 1.442695, %v3725_v15  ;;  %v1549_v17 = vmul.f32 1.442695, %v3747_v31  ;;  %vm4380_vm0 = vmmov %vm4378_vm1 }
 0x2ae   : > { %v2458_v47 = vpop.eup %2457  ;;  %v1778_v38 = vsel %vm1372_vm13, %v1736_v24, 0.0  ;;  %v1734_v5 = vsub.f32 %v3606_v9, %v1686_v8  ;;  %v1551_v8 = vmul.f32 1.442695, %v3750_v2  ;;  %vm1376_vm6 = vmand %vm1348_vm14, %vm4380_vm0  ;;  %vm1354_vm13 = vcmp.eq.s32.totalorder %v2907_v43, %v3614_v32 }
 0x2af   : > { %v1611_v61 = vpop.permute.xlu2 %1610  ;;  %v1601_v53 = vpop.permute.xlu0 %1600  ;;  %v1809_v33 = vadd.f32 %v1778_v38, %v1777_v14  ;;  %v1775_v49 = vsel %vm1341_vm9, %v1733_v37, 0.0  ;;  %vm1350_vm9 = vcmp.eq.s32.totalorder %v2846_v26, %v3614_v32  ;;  %vm4381_vm12 = vmmov %vm4380_vm0 }
 0x2b0   : > { %v1657_v57 = vadd.f32 %v2454_v29, %v1611_v61  ;;  %v1658_v51 = vadd.f32 %v2456_v48, %v1611_v61  ;;  %v2460_v16 = vpop.eup %2459  ;;  %v1653_v35 = vadd.f32 %v2444_v22, %v1601_v53  ;;  %v1654_v11 = vadd.f32 %v2458_v47, %v1601_v53  ;;  %vm1374_vm5 = vmand %vm1346_vm7, %vm4381_vm12 }
 0x2b1   : > { %v2462_v23 = vpop.eup %2461  ;;  %v1776_v9 = vsel %vm1370_vm3, %v1734_v5, 0.0  ;;  %1810 = vadd.xlane.f32.xlu1 %v1809_v33  ;;  %v1621_v36 = vpop.permute.xlu1 %1620  ;;  %v3771_v61 = vsub.f32 %v1268_v4, %v3497_v30  ;;  %vm4382_vm1 = vmmov %vm4380_vm0 }
 0x2b2   : > { %2467 = vlog2.f32 %v1657_v57  ;;  %v2464_v22 = vpop.eup %2463  ;;  %v1806_v18 = vadd.f32 %v1776_v9, %v1775_v49  ;;  %v1661_v0 = vadd.f32 %v2460_v16, %v1621_v36  ;;  %v1662_v25 = vadd.f32 %v2462_v23, %v1621_v36  ;;  %vm4383_vm3 = vmmov %vm4380_vm0 }
 0x2b3   : > { %2469 = vlog2.f32 %v1653_v35  ;;  %v2466_v1 = vpop.eup %2465  ;;  %v1696_v50 = vmul.f32 0.6931472, %v2464_v22  ;;  %v1565_v49 = vmul.f32 1.442695, %v3771_v61  ;;  %vm1378_vm14 = vmand %vm1350_vm9, %vm4383_vm3 }
 0x2b4   : > { %2471 = vlog2.f32 %v1654_v11  ;;  %v1698_v40 = vmul.f32 0.6931472, %v2466_v1  ;;  %1807 = vadd.xlane.f32.xlu0 %v1806_v18  ;;  %v1330_v16 = vpop.f32.mrf.mxu3  ;;  %v1271_v1 = vpop.f32.mrf.mxu2  ;;  %vm4387_vm12 = vmmov %vm4382_vm1 }
 0x2b5   : > { %2473 = vlog2.f32 %v1658_v51  ;;  %v1739_v41 = vsub.f32 %v3617_v45, %v1696_v50  ;;  %v1416_v45 = vsel %vm4379_vm15, %v1327_v10, -1e+30  ;;  %v1418_v18 = vsel %vm4382_vm1, %v1330_v16, -1e+30 }
 0x2b6   : > { %2475 = vlog2.f32 %v1661_v0  ;;  %v1740_v29 = vsub.f32 %v3622_v62, %v1698_v40  ;;  %v3778_v57 = vsub.f32 %v1416_v45, %v3497_v30  ;;  %v3822_v45 = vsub.f32 %v1418_v18, %v3484_v52 }
 0x2b7   : > { %2477 = vlog2.f32 %v1662_v25  ;;  %v1781_v24 = vsel %vm1347_vm8, %v1739_v41, 0.0  ;;  %vm4385_vm8 = vmmov %vm4380_vm0  ;;  %vm1356_vm15 = vcmp.eq.s32.totalorder %v4311_v58, %v3614_v32 }
 0x2b8   : > { %v2468_v28 = vpop.eup %2467  ;;  %2479 = vpow2.f32 %v1557_v60  ;;  %v1782_v27 = vsel %vm1376_vm6, %v1740_v29, 0.0  ;;  %v1567_v36 = vmul.f32 1.442695, %v3778_v57  ;;  %v1571_v43 = vmul.f32 1.442695, %v3822_v45 }
 0x2b9   : > { %v2470_v48 = vpop.eup %2469  ;;  %2481 = vpow2.f32 %v1559_v7  ;;  %v1700_v14 = vmul.f32 0.6931472, %v2468_v28  ;;  %v1815_v47 = vadd.f32 %v1782_v27, %v1781_v24  ;;  %v3814_v28 = vsub.f32 %v1271_v1, %v3484_v52 }
 0x2ba   : > { %v2472_v37 = vpop.eup %2471  ;;  %v1692_v62 = vmul.f32 0.6931472, %v2470_v48  ;;  %2483 = vpow2.f32 %v1549_v17  ;;  %vm1355_vm6 = vcmp.eq.s32.totalorder %v4311_v58, %v3609_v46 }
 0x2bb   : > { %v2474_v53 = vpop.eup %2473  ;;  %v1694_v51 = vmul.f32 0.6931472, %v2472_v37  ;;  %v1741_v38 = vsub.f32 %v3662_v20, %v1700_v14  ;;  %2485 = vpow2.f32 %v1551_v8  ;;  %v1569_v14 = vmul.f32 1.442695, %v3814_v28 }
 0x2bc   : > { %v2476_v5 = vpop.eup %2475  ;;  %v1702_v35 = vmul.f32 0.6931472, %v2474_v53  ;;  %v1737_v11 = vsub.f32 %v3635_v21, %v1692_v62  ;;  %1816 = vadd.xlane.f32.xlu0 %v1815_v47  ;;  %2487 = vpow2.f32 %v1565_v49  ;;  %v1414_v62 = vsel %vm4385_vm8, %v3700_v39, -1e+30  ;;  %vm4388_vm8 = vmmov %vm4383_vm3 }
 0x2bd   : > { %v2478_v33 = vpop.eup %2477  ;;  %v1708_v23 = vmul.f32 0.6931472, %v2476_v5  ;;  %v1738_v30 = vsub.f32 %v3680_v34, %v1694_v51  ;;  %v1783_v20 = vsel %vm1349_vm10, %v1741_v38, 0.0  ;;  %v3835_v38 = vsub.f32 %v3709_v44, %v3457_v54  ;;  %vm4386_vm10 = vmmov %vm4382_vm1 }
 0x2be   : > { %v2480_v9 = vpop.eup %2479  ;;  %v1710_v22 = vmul.f32 0.6931472, %v2478_v33  ;;  %v1779_v21 = vsel %vm1345_vm4, %v1737_v11, 0.0  ;;  %v1742_v60 = vsub.f32 %v3669_v42, %v1702_v35  ;;  %vm4384_vm4 = vmmov %vm4380_vm0  ;;  %vm1352_vm0 = vcmp.eq.s32.totalorder %v2775_v6, %v3614_v32 }
 0x2bf   : > { %v2482_v34 = vpop.eup %2481  ;;  %v1626_v10 = vpop.permute.xlu2 %1625  ;;  %v1780_v50 = vsel %vm1374_vm5, %v1738_v30, 0.0  ;;  %v1745_v55 = vsub.f32 %v3666_v13, %v1708_v23  ;;  %vm1382_vm7 = vmand %vm1354_vm13, %vm4384_vm4  ;;  %v3841_v16 = vsub.f32 %v1414_v62, %v3457_v54  ;;  %vm1360_vm13 = vcmp.eq.s32.totalorder %v2952_v3, %v3614_v32 }
 0x2c0   : > { %v1663_v42 = vadd.f32 %v2480_v9, %v1626_v10  ;;  %v1664_v0 = vadd.f32 %v2482_v34, %v1626_v10  ;;  %v1812_v25 = vadd.f32 %v1780_v50, %v1779_v21  ;;  %v1784_v7 = vsel %vm1378_vm14, %v1742_v60, 0.0  ;;  %v2484_v40 = vpop.eup %2483  ;;  %v1616_v26 = vpop.permute.xlu0 %1615  ;;  %vm1384_vm9 = vmand %vm1356_vm15, %vm4386_vm10 }
 0x2c1   : > { %v1818_v4 = vadd.f32 %v1784_v7, %v1783_v20  ;;  %v1746_v41 = vsub.f32 %v3685_v59, %v1710_v22  ;;  %v1787_v17 = vsel %vm1353_vm2, %v1745_v55, 0.0  ;;  %v2486_v29 = vpop.eup %2485  ;;  %v1659_v13 = vadd.f32 %v2484_v40, %v1616_v26  ;;  %vm1380_vm5 = vmand %vm1352_vm0, %vm4387_vm12 }
 0x2c2   : > { %2489 = vlog2.f32 %v1663_v42  ;;  %1813 = vadd.xlane.f32.xlu2 %v1812_v25  ;;  %v1660_v59 = vadd.f32 %v2486_v29, %v1616_v26  ;;  %v2488_v48 = vpop.eup %2487  ;;  %vm1351_vm2 = vcmp.eq.s32.totalorder %v2775_v6, %v3609_v46  ;;  %v1561_v20 = vmul.f32 1.442695, %v3835_v38  ;;  %vm1388_vm14 = vmand %vm1360_vm13, %vm4383_vm3 }
 0x2c3   : > { %2491 = vlog2.f32 %v1664_v0  ;;  %1819 = vadd.xlane.f32.xlu1 %v1818_v4  ;;  %v1788_v8 = vsel %vm1382_vm7, %v1746_v41, 0.0  ;;  %v1563_v22 = vmul.f32 1.442695, %v3841_v16  ;;  %vm1359_vm1 = vcmp.eq.s32.totalorder %v2952_v3, %v3609_v46  ;;  %vm4389_vm10 = vmmov %vm4383_vm3 }
 0x2c4   : > { %2493 = vpow2.f32 %v1567_v36  ;;  %v1824_v24 = vadd.f32 %v1788_v8, %v1787_v17  ;;  %vm1362_vm4 = vcmp.eq.s32.totalorder %v4320_v56, %v3614_v32  ;;  %vm1361_vm7 = vcmp.eq.s32.totalorder %v4320_v56, %v3609_v46 }
 0x2c5   : > { %2495 = vlog2.f32 %v1659_v13  ;;  %vm1390_vm15 = vmand %vm1362_vm4, %vm4388_vm8  ;;  %vm1358_vm0 = vcmp.eq.s32.totalorder %v4314_v63, %v3614_v32  ;;  %v1881_v32 = vld [vmem:[#allocation4] sm:$0xff] }
 0x2c6   : > { %2497 = vlog2.f32 %v1660_v59  ;;  %1825 = vadd.xlane.f32.xlu0 %v1824_v24 }
 0x2c7   : > { %2499 = vpow2.f32 %v1569_v14 }
 0x2c8   : > { %v2490_v27 = vpop.eup %2489  ;;  %2501 = vpow2.f32 %v1571_v43 }
 0x2c9   : > { %v2492_v37 = vpop.eup %2491  ;;  %v1712_v47 = vmul.f32 0.6931472, %v2490_v27  ;;  %v1636_v11 = vpop.permute.xlu1 %1635 }
 0x2ca   : > { %v2494_v53 = vpop.eup %2493  ;;  %v1714_v51 = vmul.f32 0.6931472, %v2492_v37  ;;  %v1667_v23 = vadd.f32 %v2488_v48, %v1636_v11 }
 0x2cb   : > { %v2496_v52 = vpop.eup %2495  ;;  %v1747_v39 = vsub.f32 %v3722_v19, %v1712_v47  ;;  %v1668_v30 = vadd.f32 %v2494_v53, %v1636_v11  ;;  %v1882_v53 = vld [vmem:[#allocation4 + $0x8] sm:$0xff] }
 0x2cc   : > { %v2498_v5 = vpop.eup %2497  ;;  %v1704_v35 = vmul.f32 0.6931472, %v2496_v52  ;;  %v1748_v33 = vsub.f32 %v3725_v15, %v1714_v51  ;;  %2503 = vlog2.f32 %v1667_v23  ;;  %v1883_v51 = vld [vmem:[#allocation4 + $0x10] sm:$0xff]  ;;  %v1896_v52 = vmax.f32 %v1882_v53, 1.0 }
 0x2cd   : > { %v1706_v49 = vmul.f32 0.6931472, %v2498_v5  ;;  %v1789_v44 = vsel %vm1355_vm6, %v1747_v39, 0.0  ;;  %2505 = vlog2.f32 %v1668_v30  ;;  %v2500_v21 = vpop.eup %2499  ;;  %vm1357_vm6 = vcmp.eq.s32.totalorder %v4314_v63, %v3609_v46  ;;  %v1885_v5 = vld [vmem:[#allocation4 + $0x20] sm:$0xff] }
 0x2ce   : > { %v1790_v19 = vsel %vm1384_vm9, %v1748_v33, 0.0  ;;  %v1743_v54 = vsub.f32 %v3747_v31, %v1704_v35  ;;  %v2502_v31 = vpop.eup %2501  ;;  %2507 = vpow2.f32 %v1561_v20  ;;  %vm1386_vm9 = vmand %vm1358_vm0, %vm4389_vm10  ;;  %v3884_v39 = vmax.f32 %v1883_v51, 1.0  ;;  %v1884_v35 = vld [vmem:[#allocation4 + $0x18] sm:$0xff] }
 0x2cf   : > { %v1827_v15 = vadd.f32 %v1790_v19, %v1789_v44  ;;  %v1744_v9 = vsub.f32 %v3750_v2, %v1706_v49  ;;  %2509 = vpow2.f32 %v1563_v22  ;;  %v3894_v11 = vmax.f32 %v1885_v5, 1.0  ;;  %v1756_v44 = vld [vmem:[#allocation5 + $0x8] sm:$0xff] }
 0x2d0   : > { %v1785_v58 = vsel %vm1351_vm2, %v1743_v54, 0.0  ;;  %v1641_v34 = vpop.permute.xlu2 %1640  ;;  %v3896_v49 = vmax.f32 %v1884_v35, 1.0  ;;  %vm1944_vm12 = vweird.f32 %v3884_v39  ;;  %v1758_v35 = vld [vmem:[#allocation5 + $0x18] sm:$0xff] }
 0x2d1   : > { %1828 = vadd.xlane.f32.xlu1 %v1827_v15  ;;  %v1786_v60 = vsel %vm1380_vm5, %v1744_v9, 0.0  ;;  %v1669_v18 = vadd.f32 %v2500_v21, %v1641_v34  ;;  %v1670_v1 = vadd.f32 %v2502_v31, %v1641_v34  ;;  %v1757_v15 = vld [vmem:[#allocation5 + $0x10] sm:$0xff]  ;;  %v1887_v9 = vld [vmem:[#allocation4 + $0x30] sm:$0xff]  ;;  %vm1929_vm5 = vweird.f32 %v1896_v52 }
 0x2d2   : > { %v1821_v36 = vadd.f32 %v1786_v60, %v1785_v58  ;;  %v2504_v2 = vpop.eup %2503  ;;  %vm1974_vm10 = vweird.f32 %v3894_v11 }
 0x2d3   : > { %2511 = vlog2.f32 %v1669_v18  ;;  %v2506_v10 = vpop.eup %2505  ;;  %v1720_v50 = vmul.f32 0.6931472, %v2504_v2  ;;  %v1935_v18 = vand.u32 2147483648, %v1896_v52 }
 0x2d4   : > { %1822 = vadd.xlane.f32.xlu2 %v1821_v36  ;;  %2513 = vlog2.f32 %v1670_v1  ;;  %v1722_v55 = vmul.f32 0.6931472, %v2506_v10  ;;  %v2508_v42 = vpop.eup %2507  ;;  %v3909_v36 = vmax.f32 %v1887_v9, 1.0  ;;  %v1948_v1 = vand.u32 2147483647, %v3884_v39  ;;  %v1886_v10 = vld [vmem:[#allocation4 + $0x28] sm:$0xff] }
 0x2d5   : > { %v1751_v6 = vsub.f32 %v3771_v61, %v1720_v50  ;;  %v2510_v25 = vpop.eup %2509  ;;  %v1933_v50 = vand.u32 2147483647, %v1896_v52 }
 0x2d6   : > { %v1752_v0 = vsub.f32 %v3778_v57, %v1722_v55  ;;  %vm1949_vm4 = vcmp.eq.f32.partialorder %v1948_v1, 8.507059e+37 }
 0x2d7   : > { %v1793_v40 = vsel %vm1359_vm1, %v1751_v6, 0.0 }
 0x2d8   : > { %v1794_v29 = vsel %vm1388_vm14, %v1752_v0, 0.0  ;;  %v1950_v0 = vand.u32 2147483648, %v3884_v39  ;;  %vm1934_vm14 = vcmp.eq.f32.partialorder %v1933_v50, 8.507059e+37 }
 0x2d9   : > { %v1631_v7 = vpop.permute.xlu0 %1630  ;;  %v2512_v4 = vpop.eup %2511  ;;  %v1833_v59 = vadd.f32 %v1794_v29, %v1793_v40  ;;  %v1761_v29 = vld [vmem:[#allocation5 + $0x30] sm:$0xff] }
 0x2da   : > { %v1665_v41 = vadd.f32 %v2508_v42, %v1631_v7  ;;  %v1666_v17 = vadd.f32 %v2510_v25, %v1631_v7  ;;  %v2514_v26 = vpop.eup %2513  ;;  %v1724_v13 = vmul.f32 0.6931472, %v2512_v4  ;;  %v1888_v7 = vld [vmem:[#allocation4 + $0x38] sm:$0xff]  ;;  %v1755_v4 = vld [vmem:[#allocation5] sm:$0xff]  ;;  %v1965_v42 = vand.u32 2147483648, %v3896_v49 }
 0x2db   : > { %v1726_v61 = vmul.f32 0.6931472, %v2514_v26  ;;  %1834 = vadd.xlane.f32.xlu0 %v1833_v59 }
 0x2dc   : > { %2515 = vlog2.f32 %v1665_v41  ;;  %v1753_v3 = vsub.f32 %v3814_v28, %v1724_v13  ;;  %v3927_v41 = vmax.f32 %v1886_v10, 1.0 }
 0x2dd   : > { %2517 = vlog2.f32 %v1666_v17  ;;  %v1754_v57 = vsub.f32 %v3822_v45, %v1726_v61  ;;  %v1936_v17 = vor.u32 1.1754944e-38, %v1935_v18  ;;  %v1978_v18 = vand.u32 2147483647, %v3894_v11 }
 0x2de   : > { %v1795_v8 = vsel %vm1361_vm7, %v1753_v3, 0.0  ;;  %2519 = vrcp.f32 %v1896_v52  ;;  %v1890_v3 = vld [vmem:[#allocation4 + $0x48] sm:$0xff] }
 0x2df   : > { %v1796_v24 = vsel %vm1390_vm15, %v1754_v57, 0.0  ;;  %2521 = vrcp.f32 %v3884_v39  ;;  %v3942_v57 = vmax.f32 %v1888_v7, 1.0 }
 0x2e0   : > { %v1836_v48 = vadd.f32 %v1796_v24, %v1795_v8 }
 0x2e2   : > { %v2516_v14 = vpop.eup %2515  ;;  %1837 = vadd.xlane.f32.xlu1 %v1836_v48  ;;  %v1951_v48 = vor.u32 1.1754944e-38, %v1950_v0 }
 0x2e3   : > { %v2518_v27 = vpop.eup %2517  ;;  %v1716_v43 = vmul.f32 0.6931472, %v2516_v14 }
 0x2e4   : > { %v1718_v37 = vmul.f32 0.6931472, %v2518_v27  ;;  %v2520_v63 = vpop.eup %2519 }
 0x2e5   : > { %v1749_v28 = vsub.f32 %v3835_v38, %v1716_v43  ;;  %v3887_v38 = vmax.f32 %v1881_v32, 1.0  ;;  %v3889_v46 = vpop.eup %2521  ;;  %v1925_v12 = vmul.f32 %v2520_v63, %v1896_v52  ;;  %vm1930_vm2 = vweird.f32 %v2520_v63  ;;  %v1759_v32 = vld [vmem:[#allocation5 + $0x20] sm:$0xff] }
 0x2e6   : > { %v1750_v56 = vsub.f32 %v3841_v16, %v1718_v37  ;;  %v1940_v16 = vmul.f32 %v3889_v46, %v3884_v39  ;;  %vm1945_vm13 = vweird.f32 %v3889_v46  ;;  %vm3918_vm1 = vmor %vm1929_vm5, %vm1930_vm2 }
 0x2e7   : > { %v1791_v45 = vsel %vm1357_vm6, %v1749_v28, 0.0  ;;  %2523 = vrcp.f32 %v3887_v38  ;;  %v1926_v33 = vsub.f32 1.0, %v1925_v12  ;;  %vm3932_vm3 = vmor %vm1944_vm12, %vm1945_vm13  ;;  %vm1914_vm7 = vweird.f32 %v3887_v38 }
 0x2e8   : > { %v1792_v62 = vsel %vm1386_vm9, %v1750_v56, 0.0  ;;  %v1941_v30 = vsub.f32 1.0, %v1940_v16  ;;  %2525 = vrcp.f32 %v3894_v11  ;;  %v1920_v43 = vand.u32 2147483648, %v3887_v38 }
 0x2e9   : > { %v1830_v47 = vadd.f32 %v1792_v62, %v1791_v45  ;;  %v1927_v19 = vmul.f32 %v2520_v63, %v1926_v33  ;;  %2527 = vrcp.f32 %v3896_v49  ;;  %v3956_v62 = vmax.f32 %v1890_v3, 1.0 }
 0x2ea   : > { %v1942_v58 = vmul.f32 %v3889_v46, %v1941_v30  ;;  %2529 = vrcp.f32 %v3909_v36  ;;  %v1918_v39 = vand.u32 2147483647, %v3887_v38  ;;  %v1921_v5 = vor.u32 1.1754944e-38, %v1920_v43 }
 0x2eb   : > { %1831 = vadd.xlane.f32.xlu2 %v1830_v47  ;;  %v1928_v60 = vadd.f32 %v2520_v63, %v1927_v19  ;;  %2531 = vrcp.f32 %v3927_v41  ;;  %vm1959_vm12 = vweird.f32 %v3896_v49  ;;  %vm1979_vm13 = vcmp.eq.f32.partialorder %v1978_v18, 8.507059e+37 }
 0x2ec   : > { %v1943_v55 = vadd.f32 %v3889_v46, %v1942_v58  ;;  %2533 = vrcp.f32 %v3942_v57  ;;  %vm1919_vm0 = vcmp.eq.f32.partialorder %v1918_v39, 8.507059e+37 }
 0x2ed   : > { %v3898_v23 = vpop.eup %2523  ;;  %v1932_v40 = vsel %vm3918_vm1, %v2520_v63, %v1928_v60  ;;  %2535 = vrcp.f32 %v3956_v62  ;;  %v1963_v60 = vand.u32 2147483647, %v3896_v49 }
 0x2ee   : > { %v1910_v54 = vmul.f32 %v3898_v23, %v3887_v38  ;;  %v3907_v34 = vpop.eup %2525  ;;  %v1947_v59 = vsel %vm3932_vm3, %v3889_v46, %v1943_v55  ;;  %v1937_v8 = vsel %vm1934_vm14, %v1936_v17, %v1932_v40  ;;  %vm1915_vm8 = vweird.f32 %v3898_v23 }
 0x2ef   : > { %v3915_v6 = vpop.eup %2527  ;;  %v1970_v25 = vmul.f32 %v3907_v34, %v3894_v11  ;;  %v1952_v28 = vsel %vm1949_vm4, %v1951_v48, %v1947_v59  ;;  %vm1916_vm15 = vmor %vm1914_vm7, %vm1915_vm8  ;;  %vm1975_vm6 = vweird.f32 %v3907_v34  ;;  %vm1964_vm1 = vcmp.eq.f32.partialorder %v1963_v60, 8.507059e+37 }
 0x2f0   : > { %v1911_v2 = vsub.f32 1.0, %v1910_v54  ;;  %v1955_v13 = vmul.f32 %v3915_v6, %v3896_v49  ;;  %v3958_v52 = vpop.eup %2529  ;;  %vm1960_vm9 = vweird.f32 %v3915_v6  ;;  %vm3992_vm2 = vmor %vm1974_vm10, %vm1975_vm6  ;;  %vm2004_vm14 = vweird.f32 %v3909_v36 }
 0x2f1   : > { %v1971_v37 = vsub.f32 1.0, %v1970_v25  ;;  %v2000_v33 = vmul.f32 %v3958_v52, %v3909_v36  ;;  %v3974_v19 = vpop.eup %2531  ;;  %vm4013_vm5 = vmor %vm1959_vm12, %vm1960_vm9  ;;  %vm2005_vm3 = vweird.f32 %v3958_v52  ;;  %vm1989_vm7 = vweird.f32 %v3927_v41 }
 0x2f2   : > { %v1912_v26 = vmul.f32 %v3898_v23, %v1911_v2  ;;  %v1956_v51 = vsub.f32 1.0, %v1955_v13  ;;  %v3979_v9 = vpop.eup %2533  ;;  %v1985_v10 = vmul.f32 %v3974_v19, %v3927_v41  ;;  %vm4035_vm4 = vmor %vm2004_vm14, %vm2005_vm3  ;;  %vm1990_vm8 = vweird.f32 %v3974_v19 }
 0x2f3   : > { %v1972_v46 = vmul.f32 %v3907_v34, %v1971_v37  ;;  %v2001_v2 = vsub.f32 1.0, %v2000_v33  ;;  %v2015_v25 = vmul.f32 %v3979_v9, %v3942_v57  ;;  %vm2019_vm6 = vweird.f32 %v3942_v57  ;;  %vm4069_vm10 = vmor %vm1989_vm7, %vm1990_vm8 }
 0x2f4   : > { %v1913_v45 = vadd.f32 %v3898_v23, %v1912_v26 }
 0x2f5   : > { %v2002_v49 = vmul.f32 %v3958_v52, %v2001_v2 }
 0x2f6   : > { %v1917_v12 = vsel %vm1916_vm15, %v3898_v23, %v1913_v45  ;;  %v1973_v23 = vadd.f32 %v3907_v34, %v1972_v46  ;;  %v2010_v45 = vand.u32 2147483648, %v3909_v36 }
 0x2f7   : > { %v1922_v54 = vsel %vm1919_vm0, %v1921_v5, %v1917_v12  ;;  %vm2020_vm0 = vweird.f32 %v3979_v9 }
 0x2f8   : > { %v1977_v7 = vsel %vm3992_vm2, %v3907_v34, %v1973_v23  ;;  %vm4077_vm9 = vmor %vm2019_vm6, %vm2020_vm0 }
 0x313   : > { %v1802_v20 = vpop.xlane.xlu1 %1801 }
 0x314   : > { %v1840_v22 = vadd.f32 %v1802_v20, %v1756_v44  ;;  %v1957_v44 = vmul.f32 %v3915_v6, %v1956_v51 }
 0x315   : > { %v1805_v21 = vpop.xlane.xlu2 %1804 }
 0x316   : > { %1854 = vst.msk [vmem:[#allocation5 + $0x8] sm:$0xff] %vm265_vm11, %v1840_v22  ;;  %v1841_v31 = vadd.f32 %v1805_v21, %v1757_v15  ;;  %v1889_v22 = vld [vmem:[#allocation4 + $0x40] sm:$0xff]  ;;  %v1980_v21 = vand.u32 2147483648, %v3894_v11  ;;  %v1958_v1 = vadd.f32 %v3915_v6, %v1957_v44  ;;  %v3997_v11 = vpop.eup %2535  ;;  %v1764_v44 = vld [vmem:[#allocation5 + $0x48] sm:$0xff] }
 0x317   : > { %v3999_v0 = vmax.f32 %v1889_v22, 1.0  ;;  %v2045_v34 = vmul.f32 %v3997_v11, %v3956_v62  ;;  %v1995_v22 = vand.u32 2147483648, %v3927_v41  ;;  %vm2050_vm2 = vweird.f32 %v3997_v11 }
 0x318   : > { %1855 = vst.msk [vmem:[#allocation5 + $0x10] sm:$0xff] %vm265_vm11, %v1841_v31  ;;  %v1891_v31 = vld [vmem:[#allocation4 + $0x50] sm:$0xff]  ;;  %v1962_v26 = vsel %vm4013_vm5, %v3915_v6, %v1958_v1  ;;  %vm2049_vm5 = vweird.f32 %v3956_v62 }
 0x319   : > { %v4007_v40 = vmax.f32 %v1891_v31, 1.0  ;;  %2537 = vrcp.f32 %v3999_v0  ;;  %v2046_v51 = vsub.f32 1.0, %v2045_v34  ;;  %v2025_v31 = vand.u32 2147483648, %v3942_v57 }
 0x31a   : > { %v1996_v17 = vor.u32 1.1754944e-38, %v1995_v22 }
 0x31b   : > { %2539 = vrcp.f32 %v4007_v40 }
 0x31d   : > { %v1799_v61 = vpop.xlane.xlu0 %1798  ;;  %v1868_v24 = vld [vmem:[#allocation5 + $0x8] sm:$0xff] }
 0x31e   : > { %v1839_v14 = vadd.f32 %v1799_v61, %v1755_v4  ;;  %v1938_v27 = vmul.f32 %v1937_v8, %v1868_v24  ;;  %v1981_v4 = vor.u32 1.1754944e-38, %v1980_v21  ;;  %v1966_v61 = vor.u32 1.1754944e-38, %v1965_v42 }
 0x31f   : > { %v1869_v56 = vld [vmem:[#allocation5 + $0x10] sm:$0xff]  ;;  %v1986_v8 = vsub.f32 1.0, %v1985_v10 }
 0x320   : > { %1853 = vst.msk [vmem:[#allocation5] sm:$0xff] %vm265_vm11, %v1839_v14  ;;  %v2120_v47 = vmul.f32 -1.0, %v1938_v27  ;;  %v1953_v53 = vmul.f32 %v1952_v28, %v1869_v56  ;;  %v1982_v13 = vsel %vm1979_vm13, %v1981_v4, %v1977_v7  ;;  %v2016_v14 = vsub.f32 1.0, %v2015_v25  ;;  %v1760_v56 = vld [vmem:[#allocation5 + $0x28] sm:$0xff] }
 0x321   : > { %v1967_v6 = vsel %vm1964_vm1, %v1966_v61, %v1962_v26  ;;  %v2003_v28 = vadd.f32 %v3958_v52, %v2002_v49  ;;  %v1894_v26 = vld [vmem:[#allocation4 + $0x68] sm:$0xff]  ;;  %v2026_v49 = vor.u32 1.1754944e-38, %v2025_v31  ;;  %vm2051_vm1 = vmor %vm2049_vm5, %vm2050_vm2 }
 0x322   : > { %2134 = vst.msk [vmem:[%s3950_s22 + $0x8] sm:$0xff] %vm265_vm11, %v2120_v47  ;;  %v2121_v63 = vmul.f32 -1.0, %v1953_v53  ;;  %v1762_v47 = vld [vmem:[#allocation5 + $0x38] sm:$0xff]  ;;  %v1987_v53 = vmul.f32 %v3974_v19, %v1986_v8 }
 0x323   : > { %v2007_v33 = vsel %vm4035_vm4, %v3958_v52, %v2003_v28  ;;  %vm2064_vm4 = vweird.f32 %v4007_v40 }
 0x324   : > { %v1811_v16 = vpop.xlane.xlu1 %1810  ;;  %2135 = vst.msk [vmem:[%s3950_s22 + $0x10] sm:$0xff] %vm265_vm11, %v2121_v63  ;;  %v2017_v63 = vmul.f32 %v3979_v9, %v2016_v14  ;;  %v1988_v23 = vadd.f32 %v3974_v19, %v1987_v53 }
 0x325   : > { %v1843_v30 = vadd.f32 %v1811_v16, %v1759_v32  ;;  %v2008_v32 = vand.u32 2147483647, %v3909_v36  ;;  %v1993_v36 = vand.u32 2147483647, %v3927_v41 }
 0x326   : > { %v2018_v52 = vadd.f32 %v3979_v9, %v2017_v63 }
 0x327   : > { %v1808_v38 = vpop.xlane.xlu0 %1807  ;;  %v1867_v20 = vld [vmem:[#allocation5] sm:$0xff]  ;;  %1857 = vst.msk [vmem:[#allocation5 + $0x20] sm:$0xff] %vm265_vm11, %v1843_v30  ;;  %vm2009_vm15 = vcmp.eq.f32.partialorder %v2008_v32, 8.507059e+37  ;;  %vm1994_vm12 = vcmp.eq.f32.partialorder %v1993_v36, 8.507059e+37  ;;  %v2068_v36 = vand.u32 2147483647, %v4007_v40 }
 0x328   : > { %v1842_v15 = vadd.f32 %v1808_v38, %v1758_v35  ;;  %v1923_v58 = vmul.f32 %v1922_v54, %v1867_v20  ;;  %v4039_v35 = vpop.eup %2537  ;;  %v1893_v54 = vld [vmem:[#allocation4 + $0x60] sm:$0xff]  ;;  %v2011_v20 = vor.u32 1.1754944e-38, %v2010_v45  ;;  %v2022_v4 = vsel %vm4077_vm9, %v3979_v9, %v2018_v52 }
 0x329   : > { %v4048_v38 = vpop.eup %2539  ;;  %v4060_v1 = vmax.f32 %v1893_v54, 1.0  ;;  %v2030_v42 = vmul.f32 %v4039_v35, %v3999_v0  ;;  %vm2035_vm8 = vweird.f32 %v4039_v35  ;;  %vm2069_vm0 = vcmp.eq.f32.partialorder %v2068_v36, 8.507059e+37 }
 0x32a   : > { %1856 = vst.msk [vmem:[#allocation5 + $0x18] sm:$0xff] %vm265_vm11, %v1842_v15  ;;  %v2119_v50 = vmul.f32 -1.0, %v1923_v58  ;;  %v2047_v15 = vmul.f32 %v3997_v11, %v2046_v51  ;;  %v2012_v21 = vsel %vm2009_vm15, %v2011_v20, %v2007_v33  ;;  %v2060_v2 = vmul.f32 %v4048_v38, %v4007_v40  ;;  %v1763_v51 = vld [vmem:[#allocation5 + $0x40] sm:$0xff] }
 0x32b   : > { %2541 = vrcp.f32 %v4060_v1  ;;  %vm2065_vm14 = vweird.f32 %v4048_v38  ;;  %vm2034_vm15 = vweird.f32 %v3999_v0  ;;  %vm2094_vm2 = vweird.f32 %v4060_v1 }
 0x32c   : > { %2133 = vst.msk [vmem:[%s3950_s22] sm:$0xff] %vm265_vm11, %v2119_v50  ;;  %v2023_v50 = vand.u32 2147483647, %v3942_v57  ;;  %v1992_v57 = vsel %vm4069_vm10, %v3974_v19, %v1988_v23  ;;  %v2048_v41 = vadd.f32 %v3997_v11, %v2047_v15  ;;  %v2053_v19 = vand.u32 2147483647, %v3956_v62  ;;  %vm4122_vm7 = vmor %vm2064_vm4, %vm2065_vm14 }
 0x32d   : > { %v1997_v34 = vsel %vm1994_vm12, %v1996_v17, %v1992_v57  ;;  %v2061_v9 = vsub.f32 1.0, %v2060_v2  ;;  %v2040_v15 = vand.u32 2147483648, %v3999_v0  ;;  %vm2036_vm6 = vmor %vm2034_vm15, %vm2035_vm8  ;;  %v1767_v2 = vld [vmem:[#allocation5 + $0x60] sm:$0xff]  ;;  %v2100_v17 = vand.u32 2147483648, %v4060_v1 }
 0x32e   : > { %v1871_v59 = vld [vmem:[#allocation5 + $0x20] sm:$0xff]  ;;  %vm2024_vm13 = vcmp.eq.f32.partialorder %v2023_v50, 8.507059e+37  ;;  %v2052_v8 = vsel %vm2051_vm1, %v3997_v11, %v2048_v41  ;;  %vm2054_vm3 = vcmp.eq.f32.partialorder %v2053_v19, 8.507059e+37 }
 0x32f   : > { %v1817_v3 = vpop.xlane.xlu0 %1816  ;;  %v1983_v24 = vmul.f32 %v1982_v13, %v1871_v59  ;;  %v2027_v59 = vsel %vm2024_vm13, %v2026_v49, %v2022_v4  ;;  %v2098_v49 = vand.u32 2147483647, %v4060_v1 }
 0x330   : > { %v1845_v48 = vadd.f32 %v1817_v3, %v1761_v29  ;;  %v2055_v29 = vand.u32 2147483648, %v3956_v62 }
 0x331   : > { %v1870_v27 = vld [vmem:[#allocation5 + $0x18] sm:$0xff]  ;;  %v2123_v43 = vmul.f32 -1.0, %v1983_v24  ;;  %v4099_v24 = vmax.f32 %v1894_v26, 1.0  ;;  %v4104_v11 = vpop.eup %2541  ;;  %vm2099_vm5 = vcmp.eq.f32.partialorder %v2098_v49, 8.507059e+37 }
 0x332   : > { %v1968_v37 = vmul.f32 %v1967_v6, %v1870_v27  ;;  %1859 = vst.msk [vmem:[#allocation5 + $0x30] sm:$0xff] %vm265_vm11, %v1845_v48  ;;  %v2056_v48 = vor.u32 1.1754944e-38, %v2055_v29  ;;  %v1765_v6 = vld [vmem:[#allocation5 + $0x50] sm:$0xff]  ;;  %v2031_v27 = vsub.f32 1.0, %v2030_v42  ;;  %vm2095_vm9 = vweird.f32 %v4104_v11  ;;  %v1768_v29 = vld [vmem:[#allocation5 + $0x68] sm:$0xff] }
 0x333   : > { %2137 = vst.msk [vmem:[%s3950_s22 + $0x20] sm:$0xff] %vm265_vm11, %v2123_v43  ;;  %2543 = vrcp.f32 %v4099_v24  ;;  %vm2096_vm12 = vmor %vm2094_vm2, %vm2095_vm9  ;;  %vm2109_vm1 = vweird.f32 %v4099_v24 }
 0x334   : > { %v2122_v39 = vmul.f32 -1.0, %v1968_v37  ;;  %v2057_v37 = vsel %vm2054_vm3, %v2056_v48, %v2052_v8  ;;  %v2032_v63 = vmul.f32 %v4039_v35, %v2031_v27 }
 0x335   : > { %v1814_v46 = vpop.xlane.xlu2 %1813 }
 0x336   : > { %v1820_v5 = vpop.xlane.xlu1 %1819  ;;  %v1844_v16 = vadd.f32 %v1814_v46, %v1760_v56  ;;  %2136 = vst.msk [vmem:[%s3950_s22 + $0x18] sm:$0xff] %vm265_vm11, %v2122_v39  ;;  %v2062_v56 = vmul.f32 %v4048_v38, %v2061_v9  ;;  %v1892_v39 = vld [vmem:[#allocation4 + $0x58] sm:$0xff]  ;;  %v2033_v54 = vadd.f32 %v4039_v35, %v2032_v63 }
 0x337   : > { %v1846_v30 = vadd.f32 %v1820_v5, %v1762_v47  ;;  %v2090_v5 = vmul.f32 %v4104_v11, %v4060_v1  ;;  %v2115_v1 = vand.u32 2147483648, %v4099_v24 }
 0x338   : > { %1858 = vst.msk [vmem:[#allocation5 + $0x28] sm:$0xff] %vm265_vm11, %v1844_v16  ;;  %v2063_v46 = vadd.f32 %v4048_v38, %v2062_v56  ;;  %v2070_v16 = vand.u32 2147483648, %v4007_v40  ;;  %v2038_v40 = vand.u32 2147483647, %v3999_v0 }
 0x339   : > { %1860 = vst.msk [vmem:[#allocation5 + $0x38] sm:$0xff] %vm265_vm11, %v1846_v30  ;;  %v1826_v58 = vpop.xlane.xlu0 %1825  ;;  %v1873_v60 = vld [vmem:[#allocation5 + $0x30] sm:$0xff]  ;;  %v4118_v30 = vmax.f32 %v1892_v39, 1.0  ;;  %v4129_v20 = vpop.eup %2543  ;;  %v2091_v22 = vsub.f32 1.0, %v2090_v5 }
 0x33a   : > { %v1848_v18 = vadd.f32 %v1826_v58, %v1764_v44  ;;  %v2013_v10 = vmul.f32 %v2012_v21, %v1873_v60  ;;  %v2067_v23 = vsel %vm4122_vm7, %v4048_v38, %v2063_v46  ;;  %v2071_v52 = vor.u32 1.1754944e-38, %v2070_v16 }
 0x33b   : > { %2545 = vrcp.f32 %v4118_v30  ;;  %v2105_v58 = vmul.f32 %v4129_v20, %v4099_v24  ;;  %v2037_v38 = vsel %vm2036_vm6, %v4039_v35, %v2033_v54  ;;  %vm2039_vm10 = vcmp.eq.f32.partialorder %v2038_v40, 8.507059e+37 }
 0x33c   : > { %1862 = vst.msk [vmem:[#allocation5 + $0x48] sm:$0xff] %vm265_vm11, %v1848_v18  ;;  %v2125_v7 = vmul.f32 -1.0, %v2013_v10  ;;  %v2072_v21 = vsel %vm2069_vm0, %v2071_v52, %v2067_v23  ;;  %v2041_v18 = vor.u32 1.1754944e-38, %v2040_v15  ;;  %v2092_v10 = vmul.f32 %v4104_v11, %v2091_v22 }
 0x33d   : > { %v2106_v41 = vsub.f32 1.0, %v2105_v58  ;;  %vm2110_vm13 = vweird.f32 %v4129_v20  ;;  %vm2079_vm7 = vweird.f32 %v4118_v30 }
 0x33e   : > { %2139 = vst.msk [vmem:[%s3950_s22 + $0x30] sm:$0xff] %vm265_vm11, %v2125_v7  ;;  %v2042_v50 = vsel %vm2039_vm10, %v2041_v18, %v2037_v38  ;;  %v2093_v35 = vadd.f32 %v4104_v11, %v2092_v10  ;;  %vm2111_vm3 = vmor %vm2109_vm1, %vm2110_vm13 }
 0x33f   : > { %v1872_v13 = vld [vmem:[#allocation5 + $0x28] sm:$0xff]  ;;  %v2107_v19 = vmul.f32 %v4129_v20, %v2106_v41 }
 0x340   : > { %v1874_v61 = vld [vmem:[#allocation5 + $0x38] sm:$0xff]  ;;  %v1998_v3 = vmul.f32 %v1997_v34, %v1872_v13  ;;  %v2097_v13 = vsel %vm2096_vm12, %v4104_v11, %v2093_v35 }
 0x341   : > { %v2028_v62 = vmul.f32 %v2027_v59, %v1874_v61  ;;  %v2546_v7 = vpop.eup %2545  ;;  %v2101_v59 = vor.u32 1.1754944e-38, %v2100_v17  ;;  %v2108_v61 = vadd.f32 %v4129_v20, %v2107_v19 }
 0x342   : > { %v2124_v14 = vmul.f32 -1.0, %v1998_v3  ;;  %v2075_v26 = vmul.f32 %v2546_v7, %v4118_v30  ;;  %vm2080_vm4 = vweird.f32 %v2546_v7 }
 0x343   : > { %v2126_v43 = vmul.f32 -1.0, %v2028_v62  ;;  %v1876_v28 = vld [vmem:[#allocation5 + $0x48] sm:$0xff]  ;;  %v2102_v8 = vsel %vm2099_vm5, %v2101_v59, %v2097_v13  ;;  %vm2081_vm8 = vmor %vm2079_vm7, %vm2080_vm4 }
 0x344   : > { %2138 = vst.msk [vmem:[%s3950_s22 + $0x28] sm:$0xff] %vm265_vm11, %v2124_v14  ;;  %v2058_v45 = vmul.f32 %v2057_v37, %v1876_v28  ;;  %v1829_v47 = vpop.xlane.xlu1 %1828  ;;  %v2076_v3 = vsub.f32 1.0, %v2075_v26  ;;  %v2113_v14 = vand.u32 2147483647, %v4099_v24  ;;  %v2116_v28 = vor.u32 1.1754944e-38, %v2115_v1 }
 0x345   : > { %2140 = vst.msk [vmem:[%s3950_s22 + $0x38] sm:$0xff] %vm265_vm11, %v2126_v43  ;;  %v1849_v53 = vadd.f32 %v1829_v47, %v1765_v6  ;;  %v1766_v6 = vld [vmem:[#allocation5 + $0x58] sm:$0xff]  ;;  %v2112_v43 = vsel %vm2111_vm3, %v4129_v20, %v2108_v61  ;;  %v2085_v24 = vand.u32 2147483648, %v4118_v30 }
 0x346   : > { %v2128_v32 = vmul.f32 -1.0, %v2058_v45  ;;  %v2077_v37 = vmul.f32 %v2546_v7, %v2076_v3  ;;  %vm2114_vm14 = vcmp.eq.f32.partialorder %v2113_v14, 8.507059e+37 }
 0x347   : > { %1863 = vst.msk [vmem:[#allocation5 + $0x50] sm:$0xff] %vm265_vm11, %v1849_v53  ;;  %v1823_v12 = vpop.xlane.xlu2 %1822  ;;  %v2117_v47 = vsel %vm2114_vm14, %v2116_v28, %v2112_v43  ;;  %v2086_v46 = vor.u32 1.1754944e-38, %v2085_v24 }
 0x348   : > { %2142 = vst.msk [vmem:[%s3950_s22 + $0x48] sm:$0xff] %vm265_vm11, %v2128_v32  ;;  %v1847_v33 = vadd.f32 %v1823_v12, %v1763_v51  ;;  %v2078_v51 = vadd.f32 %v2546_v7, %v2077_v37  ;;  %v2083_v32 = vand.u32 2147483647, %v4118_v30 }
 0x34a   : > { %1861 = vst.msk [vmem:[#allocation5 + $0x40] sm:$0xff] %vm265_vm11, %v1847_v33  ;;  %v2082_v63 = vsel %vm2081_vm8, %v2546_v7, %v2078_v51  ;;  %vm2084_vm15 = vcmp.eq.f32.partialorder %v2083_v32, 8.507059e+37 }
 0x34b   : > { %v2087_v12 = vsel %vm2084_vm15, %v2086_v46, %v2082_v63 }
 0x34e   : > { %v1877_v60 = vld [vmem:[#allocation5 + $0x50] sm:$0xff]  ;;  %v1835_v42 = vpop.xlane.xlu0 %1834 }
 0x34f   : > { %v2073_v31 = vmul.f32 %v2072_v21, %v1877_v60  ;;  %v1851_v57 = vadd.f32 %v1835_v42, %v1767_v2 }
 0x351   : > { %v2129_v0 = vmul.f32 -1.0, %v2073_v31  ;;  %v1875_v55 = vld [vmem:[#allocation5 + $0x40] sm:$0xff]  ;;  %1865 = vst.msk [vmem:[#allocation5 + $0x60] sm:$0xff] %vm265_vm11, %v1851_v57 }
 0x352   : > { %v2043_v25 = vmul.f32 %v2042_v50, %v1875_v55 }
 0x353   : > { %2143 = vst.msk [vmem:[%s3950_s22 + $0x50] sm:$0xff] %vm265_vm11, %v2129_v0 }
 0x354   : > { %v2127_v4 = vmul.f32 -1.0, %v2043_v25 }
 0x355   : > { %v1838_v34 = vpop.xlane.xlu1 %1837 }
 0x356   : > { %2141 = vst.msk [vmem:[%s3950_s22 + $0x40] sm:$0xff] %vm265_vm11, %v2127_v4  ;;  %v1852_v9 = vadd.f32 %v1838_v34, %v1768_v29 }
 0x358   : > { %1866 = vst.msk [vmem:[#allocation5 + $0x68] sm:$0xff] %vm265_vm11, %v1852_v9  ;;  %v1879_v62 = vld [vmem:[#allocation5 + $0x60] sm:$0xff] }
 0x359   : > { %v2103_v48 = vmul.f32 %v2102_v8, %v1879_v62 }
 0x35b   : > { %v2131_v27 = vmul.f32 -1.0, %v2103_v48 }
 0x35d   : > { %2145 = vst.msk [vmem:[%s3950_s22 + $0x60] sm:$0xff] %vm265_vm11, %v2131_v27 }
 0x35e   : > { %v1832_v56 = vpop.xlane.xlu2 %1831 }
 0x35f   : > { %v1850_v45 = vadd.f32 %v1832_v56, %v1766_v6  ;;  %v1880_v11 = vld [vmem:[#allocation5 + $0x68] sm:$0xff] }
 0x360   : > { %v2118_v53 = vmul.f32 %v2117_v47, %v1880_v11 }
 0x361   : > { %1864 = vst.msk [vmem:[#allocation5 + $0x58] sm:$0xff] %vm265_vm11, %v1850_v45 }
 0x362   : > { %v2132_v39 = vmul.f32 -1.0, %v2118_v53 }
 0x364   : > { %2146 = vst.msk [vmem:[%s3950_s22 + $0x68] sm:$0xff] %vm265_vm11, %v2132_v39 }
 0x368   : > { %v1878_v5 = vld [vmem:[#allocation5 + $0x58] sm:$0xff] }
 0x369   : > { %v2088_v16 = vmul.f32 %v2087_v12, %v1878_v5 }
 0x36b   : > { %v2130_v33 = vmul.f32 -1.0, %v2088_v16 }
 0x36d   : > { %2144 = vst.msk [vmem:[%s3950_s22 + $0x58] sm:$0xff] %vm265_vm11, %v2130_v33 }
 0x36e PF: > { %s14_s15 = sadd.s32 1, %s2553_s15  }
 0x36f   : > { %p11_p4 = scmp.ge.s32.totalorder %s14_s15, 4  }
 0x371   :  { %13 = sbr.rel (!%p11_p4) target bundleno = 1 (0x1), region = 69 }

</bundles_post_ra>
